<compile_context>
chip_gen: v7x
topology: tpu7x:2x2x1
jax: 0.10.0
libtpu: 0.0.40
codegen_flags: <defaults>
</compile_context>

<pallas_src>
import jax
import jax.numpy as jnp
from jax.experimental import pallas as pl
from jax.experimental.pallas import tpu as pltpu

_LANES = 128


def _round_up(x, m):
    return (x + m - 1) // m * m


def _pad_gates_matrix(w, H, Hp):
    """PyTorch gate-stacked (3H, X) -> (X, 3*Hp) with each gate lane-block padded."""
    X = w.shape[1]
    g = w.reshape(3, H, X)                                  # gate order [r, z, n]
    g = jnp.pad(g, ((0, 0), (0, Hp - H), (0, 0)))           # (3, Hp, X)
    return jnp.transpose(g, (2, 0, 1)).reshape(X, 3 * Hp)   # (X, 3*Hp)


def _pad_gates_bias(bvec, H, Hp):
    g = bvec.reshape(3, H)
    g = jnp.pad(g, ((0, 0), (0, Hp - H)))
    return g.reshape(1, 3 * Hp)


def _gru_scan_kernel(gx_ref, whh_ref, bhh_ref, out_ref, h_scratch):
    """One grid step == NB nodes of the GRUCell scan.

    gx_ref:   (NB, b, 3*Hp)  precomputed x @ W_ih^T + b_ih, gate-lane-aligned
    whh_ref:  (Hp, 3*Hp)     hidden->gates weight (transposed, gate-lane-aligned)
    bhh_ref:  (1, 3*Hp)
    out_ref:  (NB, b, Hp)    hidden states emitted for this node block
    h_scratch:(b, Hp) f32    recurrent state persisting across grid steps
    """
    j = pl.program_id(0)

    @pl.when(j == 0)
    def _():
        h_scratch[...] = jnp.zeros_like(h_scratch)

    Hp = h_scratch.shape[-1]
    nb = gx_ref.shape[0]
    whh = whh_ref[...]
    bhh = bhh_ref[...]

    def body(i, h):
        gx = gx_ref[i]                                      # (b, 3*Hp), lane-aligned slices below
        gh = jnp.dot(h, whh, preferred_element_type=jnp.float32) + bhh
        r = jax.nn.sigmoid(gx[:, 0 * Hp:1 * Hp] + gh[:, 0 * Hp:1 * Hp])
        z = jax.nn.sigmoid(gx[:, 1 * Hp:2 * Hp] + gh[:, 1 * Hp:2 * Hp])
        n_gate = jnp.tanh(gx[:, 2 * Hp:3 * Hp] + r * gh[:, 2 * Hp:3 * Hp])
        h_new = (1.0 - z) * n_gate + z * h
        out_ref[i] = h_new.astype(out_ref.dtype)            # lane-dense (b, Hp) store
        return h_new

    h_final = jax.lax.fori_loop(0, nb, body, h_scratch[...], unroll=True)
    h_scratch[...] = h_final


def gru_forward(x, w_ih, w_hh, b_ih, b_hh, *, node_block=8):
    """Forward pass matching the PyTorch module.

    x:    (b, n, t, c) float32
    w_ih: (3H, t*c)  gate order [r, z, n]  (PyTorch GRUCell.weight_ih)
    w_hh: (3H, H)                          (PyTorch GRUCell.weight_hh)
    b_ih, b_hh: (3H,)
    returns: (b, n, H) with H == t
    """
    b, n, t, c = x.shape
    H = t
    in_dim = t * c
    Hp = _round_up(H, _LANES)

    # Gate-lane-aligned, zero-padded parameters (padded lanes stay inert: h_pad == 0).
    w_ih_p = _pad_gates_matrix(w_ih.astype(jnp.float32), H, Hp)      # (in_dim, 3Hp)
    w_hh_p = _pad_gates_matrix(w_hh.astype(jnp.float32), H, Hp)      # (H, 3Hp)
    w_hh_p = jnp.pad(w_hh_p, ((0, Hp - H), (0, 0)))                  # (Hp, 3Hp)
    b_ih_p = _pad_gates_bias(b_ih.astype(jnp.float32), H, Hp)        # (1, 3Hp)
    b_hh_p = _pad_gates_bias(b_hh.astype(jnp.float32), H, Hp)        # (1, 3Hp)

    # Hoisted input-path GEMM: one large matmul over all nodes, contracting straight
    # from the (b, n, t*c) layout and emitting node-major (n, b, 3Hp) for the scan.
    x_flat = x.reshape(b, n, in_dim).astype(jnp.float32)
    gx = jnp.einsum('bni,ig->nbg', x_flat, w_ih_p,
                    preferred_element_type=jnp.float32) + b_ih_p      # (n, b, 3Hp)

    # Block the node axis; pad with zero-nodes (they run after all real nodes, so
    # real outputs are unaffected and get sliced off below).
    nb = max(1, min(node_block, n))
    n_pad = _round_up(n, nb)
    if n_pad != n:
        gx = jnp.pad(gx, ((0, n_pad - n), (0, 0), (0, 0)))

    out = pl.pallas_call(
        _gru_scan_kernel,
        out_shape=jax.ShapeDtypeStruct((n_pad, b, Hp), jnp.float32),
        grid_spec=pltpu.PrefetchScalarGridSpec(
            num_scalar_prefetch=0,
            grid=(n_pad // nb,),
            in_specs=[
                pl.BlockSpec((nb, b, 3 * Hp), lambda j: (j, 0, 0)),   # gx node block
                pl.BlockSpec((Hp, 3 * Hp), lambda j: (0, 0)),         # w_hh (resident)
                pl.BlockSpec((1, 3 * Hp), lambda j: (0, 0)),          # b_hh (resident)
            ],
            out_specs=pl.BlockSpec((nb, b, Hp), lambda j: (j, 0, 0)),
            scratch_shapes=[pltpu.VMEM((b, Hp), jnp.float32)],
        ),
        compiler_params=pltpu.CompilerParams(
            # Sequential dependency through the recurrent scratch state.
            dimension_semantics=("arbitrary",),
        ),
    )(gx, w_hh_p, b_hh_p)

    # TODO(synk): on v7x, a leading "parallel" batch-block grid axis (with per-block
    # h_scratch rows) would use both TensorCores; batch here is too small to split.
    return jnp.transpose(out[:n, :, :H], (1, 0, 2)).astype(x.dtype)   # (b, n, H)


def gru_reference(x, w_ih, w_hh, b_ih, b_hh):
    """Pure-JAX reference of the PyTorch forward (for correctness check)."""
    b, n, t, c = x.shape
    H = t
    x_em = jnp.transpose(x.reshape(b, n, t * c), (1, 0, 2))
    h = jnp.zeros((b, H), jnp.float32)
    outs = []
    for i in range(n):
        gx = x_em[i] @ w_ih.T + b_ih
        gh = h @ w_hh.T + b_hh
        r = jax.nn.sigmoid(gx[:, :H] + gh[:, :H])
        z = jax.nn.sigmoid(gx[:, H:2 * H] + gh[:, H:2 * H])
        ng = jnp.tanh(gx[:, 2 * H:] + r * gh[:, 2 * H:])
        h = (1.0 - z) * ng + z * h
        outs.append(h)
    return jnp.transpose(jnp.stack(outs, axis=0), (1, 0, 2))


if __name__ == "__main__":
    # Module hyper-params (lin / c / timesteps_output are unused in forward).
    batch = 2
    num_nodes = 16
    timesteps_input = 8    # == hidden size of the GRUCell
    features = 4
    H = timesteps_input
    in_dim = timesteps_input * features

    key = jax.random.PRNGKey(0)
    kx, k1, k2, k3, k4 = jax.random.split(key, 5)

    x = jax.random.normal(kx, (batch, num_nodes, timesteps_input, features),
                          dtype=jnp.float32)

    # Deterministic GRUCell params (PyTorch-style uniform(-1/sqrt(H), 1/sqrt(H))).
    bound = 1.0 / (H ** 0.5)
    w_ih = jax.random.uniform(k1, (3 * H, in_dim), jnp.float32, -bound, bound)
    w_hh = jax.random.uniform(k2, (3 * H, H), jnp.float32, -bound, bound)
    b_ih = jax.random.uniform(k3, (3 * H,), jnp.float32, -bound, bound)
    b_hh = jax.random.uniform(k4, (3 * H,), jnp.float32, -bound, bound)

    out = gru_forward(x, w_ih, w_hh, b_ih, b_hh, node_block=8)
    out = jax.block_until_ready(out)

    ref = gru_reference(x, w_ih, w_hh, b_ih, b_hh)
    assert out.shape == (batch, num_nodes, H)
    assert jnp.allclose(out, ref, atol=1e-4, rtol=1e-4), \
        f"max abs err = {jnp.max(jnp.abs(out - ref))}"

    print("KERNEL_OK")
</pallas_src>

<mosaic_0001>
module attributes {stable_mosaic.version = 11 : i64} {
  func.func @_gru_scan_kernel(%arg0: i32, %arg1: memref<8x2x384xf32, #tpu.memory_space<vmem>>, %arg2: memref<128x384xf32, #tpu.memory_space<vmem>>, %arg3: memref<1x384xf32, #tpu.memory_space<vmem>>, %arg4: memref<8x2x128xf32, #tpu.memory_space<vmem>>, %arg5: memref<2x128xf32, #tpu.memory_space<vmem>>) attributes {dimension_semantics = [#tpu.dimension_semantics<arbitrary>], iteration_bounds = array<i64: 2>, scalar_prefetch = 0 : i64, scratch_operands = 1 : i64, tpu.core_type = #tpu.core_type<tc>, window_params = [{transform_indices = @transform_0, window_bounds = array<i64: 8, 2, 384>}, {pipeline_mode = #tpu.pipeline_mode<synchronous>, transform_indices = @transform_1, window_bounds = array<i64: 128, 384>}, {pipeline_mode = #tpu.pipeline_mode<synchronous>, transform_indices = @transform_2, window_bounds = array<i64: 1, 384>}, {transform_indices = @transform_3, window_bounds = array<i64: 8, 2, 128>}]} {
    %c0_i32 = arith.constant 0 : i32
    %0 = arith.cmpi eq, %arg0, %c0_i32 : i32
    %1 = arith.extui %0 : i1 to i32
    %c0_i32_0 = arith.constant 0 : i32
    %2 = arith.cmpi ne, %1, %c0_i32_0 : i32
    scf.if %2 {
      %cst_72 = arith.constant 0.000000e+00 : f32
      %295 = vector.broadcast %cst_72 : f32 to vector<2x128xf32>
      %c0_73 = arith.constant 0 : index
      %c0_74 = arith.constant 0 : index
      %296 = vector.load %arg5[%c0_73, %c0_74] : memref<2x128xf32, #tpu.memory_space<vmem>>, vector<2x128xf32>
      tpu.vector_store %arg5[%c0_73, %c0_74], %295 {strides = array<i32>} : memref<2x128xf32, #tpu.memory_space<vmem>>, vector<2x128xf32>,
    } else {
    }
    %c0 = arith.constant 0 : index
    %c0_1 = arith.constant 0 : index
    %3 = vector.load %arg2[%c0, %c0_1] : memref<128x384xf32, #tpu.memory_space<vmem>>, vector<128x384xf32>
    %c0_2 = arith.constant 0 : index
    %c0_3 = arith.constant 0 : index
    %4 = vector.load %arg3[%c0_2, %c0_3] : memref<1x384xf32, #tpu.memory_space<vmem>>, vector<1x384xf32>
    %c0_4 = arith.constant 0 : index
    %c0_5 = arith.constant 0 : index
    %5 = vector.load %arg5[%c0_4, %c0_5] : memref<2x128xf32, #tpu.memory_space<vmem>>, vector<2x128xf32>
    %c0_i32_6 = arith.constant 0 : i32
    %6 = arith.index_cast %c0_i32_6 : i32 to index
    %c0_7 = arith.constant 0 : index
    %c0_8 = arith.constant 0 : index
    %7 = vector.load %arg1[%6, %c0_7, %c0_8] : memref<8x2x384xf32, #tpu.memory_space<vmem>>, vector<1x2x384xf32>
    %8 = vector.shape_cast %7 : vector<1x2x384xf32> to vector<2x384xf32>
    %cst = arith.constant dense<0.000000e+00> : vector<2x384xf32>
    %9 = tpu.matmul %5, %3, %cst {dimension_numbers = #tpu.dot_dimension_numbers<[1], [0], [0], [1], [0, 0, 1, 1], [], []>} : vector<2x128xf32>, vector<128x384xf32>, vector<2x384xf32> -> vector<2x384xf32>
    %10 = vector.broadcast %4 : vector<1x384xf32> to vector<2x384xf32>
    %11 = arith.addf %9, %10 : vector<2x384xf32>
    %12 = vector.extract_strided_slice %8 {offsets = [0, 0], sizes = [2, 128], strides = [1, 1]} : vector<2x384xf32> to vector<2x128xf32>
    %13 = vector.extract_strided_slice %11 {offsets = [0, 0], sizes = [2, 128], strides = [1, 1]} : vector<2x384xf32> to vector<2x128xf32>
    %14 = arith.addf %12, %13 : vector<2x128xf32>
    %15 = arith.negf %14 : vector<2x128xf32>
    %16 = math.exp %15 : vector<2x128xf32>
    %cst_9 = arith.constant 1.000000e+00 : f32
    %17 = vector.broadcast %cst_9 : f32 to vector<2x128xf32>
    %18 = arith.addf %17, %16 : vector<2x128xf32>
    %19 = arith.divf %17, %18 : vector<2x128xf32>
    %20 = vector.extract_strided_slice %8 {offsets = [0, 128], sizes = [2, 128], strides = [1, 1]} : vector<2x384xf32> to vector<2x128xf32>
    %21 = vector.extract_strided_slice %11 {offsets = [0, 128], sizes = [2, 128], strides = [1, 1]} : vector<2x384xf32> to vector<2x128xf32>
    %22 = arith.addf %20, %21 : vector<2x128xf32>
    %23 = arith.negf %22 : vector<2x128xf32>
    %24 = math.exp %23 : vector<2x128xf32>
    %cst_10 = arith.constant 1.000000e+00 : f32
    %25 = vector.broadcast %cst_10 : f32 to vector<2x128xf32>
    %26 = arith.addf %25, %24 : vector<2x128xf32>
    %27 = arith.divf %25, %26 : vector<2x128xf32>
    %28 = vector.extract_strided_slice %8 {offsets = [0, 256], sizes = [2, 128], strides = [1, 1]} : vector<2x384xf32> to vector<2x128xf32>
    %29 = vector.extract_strided_slice %11 {offsets = [0, 256], sizes = [2, 128], strides = [1, 1]} : vector<2x384xf32> to vector<2x128xf32>
    %30 = arith.mulf %19, %29 : vector<2x128xf32>
    %31 = arith.addf %28, %30 : vector<2x128xf32>
    %32 = math.tanh %31 : vector<2x128xf32>
    %cst_11 = arith.constant 1.000000e+00 : f32
    %33 = vector.broadcast %cst_11 : f32 to vector<2x128xf32>
    %34 = arith.subf %33, %27 : vector<2x128xf32>
    %35 = arith.mulf %34, %32 : vector<2x128xf32>
    %36 = arith.mulf %27, %5 : vector<2x128xf32>
    %37 = arith.addf %35, %36 : vector<2x128xf32>
    %38 = arith.index_cast %c0_i32_6 : i32 to index
    %c0_12 = arith.constant 0 : index
    %c0_13 = arith.constant 0 : index
    %39 = vector.load %arg4[%38, %c0_12, %c0_13] : memref<8x2x128xf32, #tpu.memory_space<vmem>>, vector<1x2x128xf32>
    %40 = vector.shape_cast %39 : vector<1x2x128xf32> to vector<2x128xf32>
    %41 = vector.shape_cast %37 : vector<2x128xf32> to vector<1x2x128xf32>
    tpu.vector_store %arg4[%38, %c0_12, %c0_13], %41 {strides = array<i32>} : memref<8x2x128xf32, #tpu.memory_space<vmem>>, vector<1x2x128xf32>,
    %c1_i32 = arith.constant 1 : i32
    %42 = arith.index_cast %c1_i32 : i32 to index
    %c0_14 = arith.constant 0 : index
    %c0_15 = arith.constant 0 : index
    %43 = vector.load %arg1[%42, %c0_14, %c0_15] : memref<8x2x384xf32, #tpu.memory_space<vmem>>, vector<1x2x384xf32>
    %44 = vector.shape_cast %43 : vector<1x2x384xf32> to vector<2x384xf32>
    %cst_16 = arith.constant dense<0.000000e+00> : vector<2x384xf32>
    %45 = tpu.matmul %37, %3, %cst_16 {dimension_numbers = #tpu.dot_dimension_numbers<[1], [0], [0], [1], [0, 0, 1, 1], [], []>} : vector<2x128xf32>, vector<128x384xf32>, vector<2x384xf32> -> vector<2x384xf32>
    %46 = vector.broadcast %4 : vector<1x384xf32> to vector<2x384xf32>
    %47 = arith.addf %45, %46 : vector<2x384xf32>
    %48 = vector.extract_strided_slice %44 {offsets = [0, 0], sizes = [2, 128], strides = [1, 1]} : vector<2x384xf32> to vector<2x128xf32>
    %49 = vector.extract_strided_slice %47 {offsets = [0, 0], sizes = [2, 128], strides = [1, 1]} : vector<2x384xf32> to vector<2x128xf32>
    %50 = arith.addf %48, %49 : vector<2x128xf32>
    %51 = arith.negf %50 : vector<2x128xf32>
    %52 = math.exp %51 : vector<2x128xf32>
    %cst_17 = arith.constant 1.000000e+00 : f32
    %53 = vector.broadcast %cst_17 : f32 to vector<2x128xf32>
    %54 = arith.addf %53, %52 : vector<2x128xf32>
    %55 = arith.divf %53, %54 : vector<2x128xf32>
    %56 = vector.extract_strided_slice %44 {offsets = [0, 128], sizes = [2, 128], strides = [1, 1]} : vector<2x384xf32> to vector<2x128xf32>
    %57 = vector.extract_strided_slice %47 {offsets = [0, 128], sizes = [2, 128], strides = [1, 1]} : vector<2x384xf32> to vector<2x128xf32>
    %58 = arith.addf %56, %57 : vector<2x128xf32>
    %59 = arith.negf %58 : vector<2x128xf32>
    %60 = math.exp %59 : vector<2x128xf32>
    %cst_18 = arith.constant 1.000000e+00 : f32
    %61 = vector.broadcast %cst_18 : f32 to vector<2x128xf32>
    %62 = arith.addf %61, %60 : vector<2x128xf32>
    %63 = arith.divf %61, %62 : vector<2x128xf32>
    %64 = vector.extract_strided_slice %44 {offsets = [0, 256], sizes = [2, 128], strides = [1, 1]} : vector<2x384xf32> to vector<2x128xf32>
    %65 = vector.extract_strided_slice %47 {offsets = [0, 256], sizes = [2, 128], strides = [1, 1]} : vector<2x384xf32> to vector<2x128xf32>
    %66 = arith.mulf %55, %65 : vector<2x128xf32>
    %67 = arith.addf %64, %66 : vector<2x128xf32>
    %68 = math.tanh %67 : vector<2x128xf32>
    %cst_19 = arith.constant 1.000000e+00 : f32
    %69 = vector.broadcast %cst_19 : f32 to vector<2x128xf32>
    %70 = arith.subf %69, %63 : vector<2x128xf32>
    %71 = arith.mulf %70, %68 : vector<2x128xf32>
    %72 = arith.mulf %63, %37 : vector<2x128xf32>
    %73 = arith.addf %71, %72 : vector<2x128xf32>
    %74 = arith.index_cast %c1_i32 : i32 to index
    %c0_20 = arith.constant 0 : index
    %c0_21 = arith.constant 0 : index
    %75 = vector.load %arg4[%74, %c0_20, %c0_21] : memref<8x2x128xf32, #tpu.memory_space<vmem>>, vector<1x2x128xf32>
    %76 = vector.shape_cast %75 : vector<1x2x128xf32> to vector<2x128xf32>
    %77 = vector.shape_cast %73 : vector<2x128xf32> to vector<1x2x128xf32>
    tpu.vector_store %arg4[%74, %c0_20, %c0_21], %77 {strides = array<i32>} : memref<8x2x128xf32, #tpu.memory_space<vmem>>, vector<1x2x128xf32>,
    %c2_i32 = arith.constant 2 : i32
    %78 = arith.index_cast %c2_i32 : i32 to index
    %c0_22 = arith.constant 0 : index
    %c0_23 = arith.constant 0 : index
    %79 = vector.load %arg1[%78, %c0_22, %c0_23] : memref<8x2x384xf32, #tpu.memory_space<vmem>>, vector<1x2x384xf32>
    %80 = vector.shape_cast %79 : vector<1x2x384xf32> to vector<2x384xf32>
    %cst_24 = arith.constant dense<0.000000e+00> : vector<2x384xf32>
    %81 = tpu.matmul %73, %3, %cst_24 {dimension_numbers = #tpu.dot_dimension_numbers<[1], [0], [0], [1], [0, 0, 1, 1], [], []>} : vector<2x128xf32>, vector<128x384xf32>, vector<2x384xf32> -> vector<2x384xf32>
    %82 = vector.broadcast %4 : vector<1x384xf32> to vector<2x384xf32>
    %83 = arith.addf %81, %82 : vector<2x384xf32>
    %84 = vector.extract_strided_slice %80 {offsets = [0, 0], sizes = [2, 128], strides = [1, 1]} : vector<2x384xf32> to vector<2x128xf32>
    %85 = vector.extract_strided_slice %83 {offsets = [0, 0], sizes = [2, 128], strides = [1, 1]} : vector<2x384xf32> to vector<2x128xf32>
    %86 = arith.addf %84, %85 : vector<2x128xf32>
    %87 = arith.negf %86 : vector<2x128xf32>
    %88 = math.exp %87 : vector<2x128xf32>
    %cst_25 = arith.constant 1.000000e+00 : f32
    %89 = vector.broadcast %cst_25 : f32 to vector<2x128xf32>
    %90 = arith.addf %89, %88 : vector<2x128xf32>
    %91 = arith.divf %89, %90 : vector<2x128xf32>
    %92 = vector.extract_strided_slice %80 {offsets = [0, 128], sizes = [2, 128], strides = [1, 1]} : vector<2x384xf32> to vector<2x128xf32>
    %93 = vector.extract_strided_slice %83 {offsets = [0, 128], sizes = [2, 128], strides = [1, 1]} : vector<2x384xf32> to vector<2x128xf32>
    %94 = arith.addf %92, %93 : vector<2x128xf32>
    %95 = arith.negf %94 : vector<2x128xf32>
    %96 = math.exp %95 : vector<2x128xf32>
    %cst_26 = arith.constant 1.000000e+00 : f32
    %97 = vector.broadcast %cst_26 : f32 to vector<2x128xf32>
    %98 = arith.addf %97, %96 : vector<2x128xf32>
    %99 = arith.divf %97, %98 : vector<2x128xf32>
    %100 = vector.extract_strided_slice %80 {offsets = [0, 256], sizes = [2, 128], strides = [1, 1]} : vector<2x384xf32> to vector<2x128xf32>
    %101 = vector.extract_strided_slice %83 {offsets = [0, 256], sizes = [2, 128], strides = [1, 1]} : vector<2x384xf32> to vector<2x128xf32>
    %102 = arith.mulf %91, %101 : vector<2x128xf32>
    %103 = arith.addf %100, %102 : vector<2x128xf32>
    %104 = math.tanh %103 : vector<2x128xf32>
    %cst_27 = arith.constant 1.000000e+00 : f32
    %105 = vector.broadcast %cst_27 : f32 to vector<2x128xf32>
    %106 = arith.subf %105, %99 : vector<2x128xf32>
    %107 = arith.mulf %106, %104 : vector<2x128xf32>
    %108 = arith.mulf %99, %73 : vector<2x128xf32>
    %109 = arith.addf %107, %108 : vector<2x128xf32>
    %110 = arith.index_cast %c2_i32 : i32 to index
    %c0_28 = arith.constant 0 : index
    %c0_29 = arith.constant 0 : index
    %111 = vector.load %arg4[%110, %c0_28, %c0_29] : memref<8x2x128xf32, #tpu.memory_space<vmem>>, vector<1x2x128xf32>
    %112 = vector.shape_cast %111 : vector<1x2x128xf32> to vector<2x128xf32>
    %113 = vector.shape_cast %109 : vector<2x128xf32> to vector<1x2x128xf32>
    tpu.vector_store %arg4[%110, %c0_28, %c0_29], %113 {strides = array<i32>} : memref<8x2x128xf32, #tpu.memory_space<vmem>>, vector<1x2x128xf32>,
    %c3_i32 = arith.constant 3 : i32
    %114 = arith.index_cast %c3_i32 : i32 to index
    %c0_30 = arith.constant 0 : index
    %c0_31 = arith.constant 0 : index
    %115 = vector.load %arg1[%114, %c0_30, %c0_31] : memref<8x2x384xf32, #tpu.memory_space<vmem>>, vector<1x2x384xf32>
    %116 = vector.shape_cast %115 : vector<1x2x384xf32> to vector<2x384xf32>
    %cst_32 = arith.constant dense<0.000000e+00> : vector<2x384xf32>
    %117 = tpu.matmul %109, %3, %cst_32 {dimension_numbers = #tpu.dot_dimension_numbers<[1], [0], [0], [1], [0, 0, 1, 1], [], []>} : vector<2x128xf32>, vector<128x384xf32>, vector<2x384xf32> -> vector<2x384xf32>
    %118 = vector.broadcast %4 : vector<1x384xf32> to vector<2x384xf32>
    %119 = arith.addf %117, %118 : vector<2x384xf32>
    %120 = vector.extract_strided_slice %116 {offsets = [0, 0], sizes = [2, 128], strides = [1, 1]} : vector<2x384xf32> to vector<2x128xf32>
    %121 = vector.extract_strided_slice %119 {offsets = [0, 0], sizes = [2, 128], strides = [1, 1]} : vector<2x384xf32> to vector<2x128xf32>
    %122 = arith.addf %120, %121 : vector<2x128xf32>
    %123 = arith.negf %122 : vector<2x128xf32>
    %124 = math.exp %123 : vector<2x128xf32>
    %cst_33 = arith.constant 1.000000e+00 : f32
    %125 = vector.broadcast %cst_33 : f32 to vector<2x128xf32>
    %126 = arith.addf %125, %124 : vector<2x128xf32>
    %127 = arith.divf %125, %126 : vector<2x128xf32>
    %128 = vector.extract_strided_slice %116 {offsets = [0, 128], sizes = [2, 128], strides = [1, 1]} : vector<2x384xf32> to vector<2x128xf32>
    %129 = vector.extract_strided_slice %119 {offsets = [0, 128], sizes = [2, 128], strides = [1, 1]} : vector<2x384xf32> to vector<2x128xf32>
    %130 = arith.addf %128, %129 : vector<2x128xf32>
    %131 = arith.negf %130 : vector<2x128xf32>
    %132 = math.exp %131 : vector<2x128xf32>
    %cst_34 = arith.constant 1.000000e+00 : f32
    %133 = vector.broadcast %cst_34 : f32 to vector<2x128xf32>
    %134 = arith.addf %133, %132 : vector<2x128xf32>
    %135 = arith.divf %133, %134 : vector<2x128xf32>
    %136 = vector.extract_strided_slice %116 {offsets = [0, 256], sizes = [2, 128], strides = [1, 1]} : vector<2x384xf32> to vector<2x128xf32>
    %137 = vector.extract_strided_slice %119 {offsets = [0, 256], sizes = [2, 128], strides = [1, 1]} : vector<2x384xf32> to vector<2x128xf32>
    %138 = arith.mulf %127, %137 : vector<2x128xf32>
    %139 = arith.addf %136, %138 : vector<2x128xf32>
    %140 = math.tanh %139 : vector<2x128xf32>
    %cst_35 = arith.constant 1.000000e+00 : f32
    %141 = vector.broadcast %cst_35 : f32 to vector<2x128xf32>
    %142 = arith.subf %141, %135 : vector<2x128xf32>
    %143 = arith.mulf %142, %140 : vector<2x128xf32>
    %144 = arith.mulf %135, %109 : vector<2x128xf32>
    %145 = arith.addf %143, %144 : vector<2x128xf32>
    %146 = arith.index_cast %c3_i32 : i32 to index
    %c0_36 = arith.constant 0 : index
    %c0_37 = arith.constant 0 : index
    %147 = vector.load %arg4[%146, %c0_36, %c0_37] : memref<8x2x128xf32, #tpu.memory_space<vmem>>, vector<1x2x128xf32>
    %148 = vector.shape_cast %147 : vector<1x2x128xf32> to vector<2x128xf32>
    %149 = vector.shape_cast %145 : vector<2x128xf32> to vector<1x2x128xf32>
    tpu.vector_store %arg4[%146, %c0_36, %c0_37], %149 {strides = array<i32>} : memref<8x2x128xf32, #tpu.memory_space<vmem>>, vector<1x2x128xf32>,
    %c4_i32 = arith.constant 4 : i32
    %150 = arith.index_cast %c4_i32 : i32 to index
    %c0_38 = arith.constant 0 : index
    %c0_39 = arith.constant 0 : index
    %151 = vector.load %arg1[%150, %c0_38, %c0_39] : memref<8x2x384xf32, #tpu.memory_space<vmem>>, vector<1x2x384xf32>
    %152 = vector.shape_cast %151 : vector<1x2x384xf32> to vector<2x384xf32>
    %cst_40 = arith.constant dense<0.000000e+00> : vector<2x384xf32>
    %153 = tpu.matmul %145, %3, %cst_40 {dimension_numbers = #tpu.dot_dimension_numbers<[1], [0], [0], [1], [0, 0, 1, 1], [], []>} : vector<2x128xf32>, vector<128x384xf32>, vector<2x384xf32> -> vector<2x384xf32>
    %154 = vector.broadcast %4 : vector<1x384xf32> to vector<2x384xf32>
    %155 = arith.addf %153, %154 : vector<2x384xf32>
    %156 = vector.extract_strided_slice %152 {offsets = [0, 0], sizes = [2, 128], strides = [1, 1]} : vector<2x384xf32> to vector<2x128xf32>
    %157 = vector.extract_strided_slice %155 {offsets = [0, 0], sizes = [2, 128], strides = [1, 1]} : vector<2x384xf32> to vector<2x128xf32>
    %158 = arith.addf %156, %157 : vector<2x128xf32>
    %159 = arith.negf %158 : vector<2x128xf32>
    %160 = math.exp %159 : vector<2x128xf32>
    %cst_41 = arith.constant 1.000000e+00 : f32
    %161 = vector.broadcast %cst_41 : f32 to vector<2x128xf32>
    %162 = arith.addf %161, %160 : vector<2x128xf32>
    %163 = arith.divf %161, %162 : vector<2x128xf32>
    %164 = vector.extract_strided_slice %152 {offsets = [0, 128], sizes = [2, 128], strides = [1, 1]} : vector<2x384xf32> to vector<2x128xf32>
    %165 = vector.extract_strided_slice %155 {offsets = [0, 128], sizes = [2, 128], strides = [1, 1]} : vector<2x384xf32> to vector<2x128xf32>
    %166 = arith.addf %164, %165 : vector<2x128xf32>
    %167 = arith.negf %166 : vector<2x128xf32>
    %168 = math.exp %167 : vector<2x128xf32>
    %cst_42 = arith.constant 1.000000e+00 : f32
    %169 = vector.broadcast %cst_42 : f32 to vector<2x128xf32>
    %170 = arith.addf %169, %168 : vector<2x128xf32>
    %171 = arith.divf %169, %170 : vector<2x128xf32>
    %172 = vector.extract_strided_slice %152 {offsets = [0, 256], sizes = [2, 128], strides = [1, 1]} : vector<2x384xf32> to vector<2x128xf32>
    %173 = vector.extract_strided_slice %155 {offsets = [0, 256], sizes = [2, 128], strides = [1, 1]} : vector<2x384xf32> to vector<2x128xf32>
    %174 = arith.mulf %163, %173 : vector<2x128xf32>
    %175 = arith.addf %172, %174 : vector<2x128xf32>
    %176 = math.tanh %175 : vector<2x128xf32>
    %cst_43 = arith.constant 1.000000e+00 : f32
    %177 = vector.broadcast %cst_43 : f32 to vector<2x128xf32>
    %178 = arith.subf %177, %171 : vector<2x128xf32>
    %179 = arith.mulf %178, %176 : vector<2x128xf32>
    %180 = arith.mulf %171, %145 : vector<2x128xf32>
    %181 = arith.addf %179, %180 : vector<2x128xf32>
    %182 = arith.index_cast %c4_i32 : i32 to index
    %c0_44 = arith.constant 0 : index
    %c0_45 = arith.constant 0 : index
    %183 = vector.load %arg4[%182, %c0_44, %c0_45] : memref<8x2x128xf32, #tpu.memory_space<vmem>>, vector<1x2x128xf32>
    %184 = vector.shape_cast %183 : vector<1x2x128xf32> to vector<2x128xf32>
    %185 = vector.shape_cast %181 : vector<2x128xf32> to vector<1x2x128xf32>
    tpu.vector_store %arg4[%182, %c0_44, %c0_45], %185 {strides = array<i32>} : memref<8x2x128xf32, #tpu.memory_space<vmem>>, vector<1x2x128xf32>,
    %c5_i32 = arith.constant 5 : i32
    %186 = arith.index_cast %c5_i32 : i32 to index
    %c0_46 = arith.constant 0 : index
    %c0_47 = arith.constant 0 : index
    %187 = vector.load %arg1[%186, %c0_46, %c0_47] : memref<8x2x384xf32, #tpu.memory_space<vmem>>, vector<1x2x384xf32>
    %188 = vector.shape_cast %187 : vector<1x2x384xf32> to vector<2x384xf32>
    %cst_48 = arith.constant dense<0.000000e+00> : vector<2x384xf32>
    %189 = tpu.matmul %181, %3, %cst_48 {dimension_numbers = #tpu.dot_dimension_numbers<[1], [0], [0], [1], [0, 0, 1, 1], [], []>} : vector<2x128xf32>, vector<128x384xf32>, vector<2x384xf32> -> vector<2x384xf32>
    %190 = vector.broadcast %4 : vector<1x384xf32> to vector<2x384xf32>
    %191 = arith.addf %189, %190 : vector<2x384xf32>
    %192 = vector.extract_strided_slice %188 {offsets = [0, 0], sizes = [2, 128], strides = [1, 1]} : vector<2x384xf32> to vector<2x128xf32>
    %193 = vector.extract_strided_slice %191 {offsets = [0, 0], sizes = [2, 128], strides = [1, 1]} : vector<2x384xf32> to vector<2x128xf32>
    %194 = arith.addf %192, %193 : vector<2x128xf32>
    %195 = arith.negf %194 : vector<2x128xf32>
    %196 = math.exp %195 : vector<2x128xf32>
    %cst_49 = arith.constant 1.000000e+00 : f32
    %197 = vector.broadcast %cst_49 : f32 to vector<2x128xf32>
    %198 = arith.addf %197, %196 : vector<2x128xf32>
    %199 = arith.divf %197, %198 : vector<2x128xf32>
    %200 = vector.extract_strided_slice %188 {offsets = [0, 128], sizes = [2, 128], strides = [1, 1]} : vector<2x384xf32> to vector<2x128xf32>
    %201 = vector.extract_strided_slice %191 {offsets = [0, 128], sizes = [2, 128], strides = [1, 1]} : vector<2x384xf32> to vector<2x128xf32>
    %202 = arith.addf %200, %201 : vector<2x128xf32>
    %203 = arith.negf %202 : vector<2x128xf32>
    %204 = math.exp %203 : vector<2x128xf32>
    %cst_50 = arith.constant 1.000000e+00 : f32
    %205 = vector.broadcast %cst_50 : f32 to vector<2x128xf32>
    %206 = arith.addf %205, %204 : vector<2x128xf32>
    %207 = arith.divf %205, %206 : vector<2x128xf32>
    %208 = vector.extract_strided_slice %188 {offsets = [0, 256], sizes = [2, 128], strides = [1, 1]} : vector<2x384xf32> to vector<2x128xf32>
    %209 = vector.extract_strided_slice %191 {offsets = [0, 256], sizes = [2, 128], strides = [1, 1]} : vector<2x384xf32> to vector<2x128xf32>
    %210 = arith.mulf %199, %209 : vector<2x128xf32>
    %211 = arith.addf %208, %210 : vector<2x128xf32>
    %212 = math.tanh %211 : vector<2x128xf32>
    %cst_51 = arith.constant 1.000000e+00 : f32
    %213 = vector.broadcast %cst_51 : f32 to vector<2x128xf32>
    %214 = arith.subf %213, %207 : vector<2x128xf32>
    %215 = arith.mulf %214, %212 : vector<2x128xf32>
    %216 = arith.mulf %207, %181 : vector<2x128xf32>
    %217 = arith.addf %215, %216 : vector<2x128xf32>
    %218 = arith.index_cast %c5_i32 : i32 to index
    %c0_52 = arith.constant 0 : index
    %c0_53 = arith.constant 0 : index
    %219 = vector.load %arg4[%218, %c0_52, %c0_53] : memref<8x2x128xf32, #tpu.memory_space<vmem>>, vector<1x2x128xf32>
    %220 = vector.shape_cast %219 : vector<1x2x128xf32> to vector<2x128xf32>
    %221 = vector.shape_cast %217 : vector<2x128xf32> to vector<1x2x128xf32>
    tpu.vector_store %arg4[%218, %c0_52, %c0_53], %221 {strides = array<i32>} : memref<8x2x128xf32, #tpu.memory_space<vmem>>, vector<1x2x128xf32>,
    %c6_i32 = arith.constant 6 : i32
    %222 = arith.index_cast %c6_i32 : i32 to index
    %c0_54 = arith.constant 0 : index
    %c0_55 = arith.constant 0 : index
    %223 = vector.load %arg1[%222, %c0_54, %c0_55] : memref<8x2x384xf32, #tpu.memory_space<vmem>>, vector<1x2x384xf32>
    %224 = vector.shape_cast %223 : vector<1x2x384xf32> to vector<2x384xf32>
    %cst_56 = arith.constant dense<0.000000e+00> : vector<2x384xf32>
    %225 = tpu.matmul %217, %3, %cst_56 {dimension_numbers = #tpu.dot_dimension_numbers<[1], [0], [0], [1], [0, 0, 1, 1], [], []>} : vector<2x128xf32>, vector<128x384xf32>, vector<2x384xf32> -> vector<2x384xf32>
    %226 = vector.broadcast %4 : vector<1x384xf32> to vector<2x384xf32>
    %227 = arith.addf %225, %226 : vector<2x384xf32>
    %228 = vector.extract_strided_slice %224 {offsets = [0, 0], sizes = [2, 128], strides = [1, 1]} : vector<2x384xf32> to vector<2x128xf32>
    %229 = vector.extract_strided_slice %227 {offsets = [0, 0], sizes = [2, 128], strides = [1, 1]} : vector<2x384xf32> to vector<2x128xf32>
    %230 = arith.addf %228, %229 : vector<2x128xf32>
    %231 = arith.negf %230 : vector<2x128xf32>
    %232 = math.exp %231 : vector<2x128xf32>
    %cst_57 = arith.constant 1.000000e+00 : f32
    %233 = vector.broadcast %cst_57 : f32 to vector<2x128xf32>
    %234 = arith.addf %233, %232 : vector<2x128xf32>
    %235 = arith.divf %233, %234 : vector<2x128xf32>
    %236 = vector.extract_strided_slice %224 {offsets = [0, 128], sizes = [2, 128], strides = [1, 1]} : vector<2x384xf32> to vector<2x128xf32>
    %237 = vector.extract_strided_slice %227 {offsets = [0, 128], sizes = [2, 128], strides = [1, 1]} : vector<2x384xf32> to vector<2x128xf32>
    %238 = arith.addf %236, %237 : vector<2x128xf32>
    %239 = arith.negf %238 : vector<2x128xf32>
    %240 = math.exp %239 : vector<2x128xf32>
    %cst_58 = arith.constant 1.000000e+00 : f32
    %241 = vector.broadcast %cst_58 : f32 to vector<2x128xf32>
    %242 = arith.addf %241, %240 : vector<2x128xf32>
    %243 = arith.divf %241, %242 : vector<2x128xf32>
    %244 = vector.extract_strided_slice %224 {offsets = [0, 256], sizes = [2, 128], strides = [1, 1]} : vector<2x384xf32> to vector<2x128xf32>
    %245 = vector.extract_strided_slice %227 {offsets = [0, 256], sizes = [2, 128], strides = [1, 1]} : vector<2x384xf32> to vector<2x128xf32>
    %246 = arith.mulf %235, %245 : vector<2x128xf32>
    %247 = arith.addf %244, %246 : vector<2x128xf32>
    %248 = math.tanh %247 : vector<2x128xf32>
    %cst_59 = arith.constant 1.000000e+00 : f32
    %249 = vector.broadcast %cst_59 : f32 to vector<2x128xf32>
    %250 = arith.subf %249, %243 : vector<2x128xf32>
    %251 = arith.mulf %250, %248 : vector<2x128xf32>
    %252 = arith.mulf %243, %217 : vector<2x128xf32>
    %253 = arith.addf %251, %252 : vector<2x128xf32>
    %254 = arith.index_cast %c6_i32 : i32 to index
    %c0_60 = arith.constant 0 : index
    %c0_61 = arith.constant 0 : index
    %255 = vector.load %arg4[%254, %c0_60, %c0_61] : memref<8x2x128xf32, #tpu.memory_space<vmem>>, vector<1x2x128xf32>
    %256 = vector.shape_cast %255 : vector<1x2x128xf32> to vector<2x128xf32>
    %257 = vector.shape_cast %253 : vector<2x128xf32> to vector<1x2x128xf32>
    tpu.vector_store %arg4[%254, %c0_60, %c0_61], %257 {strides = array<i32>} : memref<8x2x128xf32, #tpu.memory_space<vmem>>, vector<1x2x128xf32>,
    %c7_i32 = arith.constant 7 : i32
    %258 = arith.index_cast %c7_i32 : i32 to index
    %c0_62 = arith.constant 0 : index
    %c0_63 = arith.constant 0 : index
    %259 = vector.load %arg1[%258, %c0_62, %c0_63] : memref<8x2x384xf32, #tpu.memory_space<vmem>>, vector<1x2x384xf32>
    %260 = vector.shape_cast %259 : vector<1x2x384xf32> to vector<2x384xf32>
    %cst_64 = arith.constant dense<0.000000e+00> : vector<2x384xf32>
    %261 = tpu.matmul %253, %3, %cst_64 {dimension_numbers = #tpu.dot_dimension_numbers<[1], [0], [0], [1], [0, 0, 1, 1], [], []>} : vector<2x128xf32>, vector<128x384xf32>, vector<2x384xf32> -> vector<2x384xf32>
    %262 = vector.broadcast %4 : vector<1x384xf32> to vector<2x384xf32>
    %263 = arith.addf %261, %262 : vector<2x384xf32>
    %264 = vector.extract_strided_slice %260 {offsets = [0, 0], sizes = [2, 128], strides = [1, 1]} : vector<2x384xf32> to vector<2x128xf32>
    %265 = vector.extract_strided_slice %263 {offsets = [0, 0], sizes = [2, 128], strides = [1, 1]} : vector<2x384xf32> to vector<2x128xf32>
    %266 = arith.addf %264, %265 : vector<2x128xf32>
    %267 = arith.negf %266 : vector<2x128xf32>
    %268 = math.exp %267 : vector<2x128xf32>
    %cst_65 = arith.constant 1.000000e+00 : f32
    %269 = vector.broadcast %cst_65 : f32 to vector<2x128xf32>
    %270 = arith.addf %269, %268 : vector<2x128xf32>
    %271 = arith.divf %269, %270 : vector<2x128xf32>
    %272 = vector.extract_strided_slice %260 {offsets = [0, 128], sizes = [2, 128], strides = [1, 1]} : vector<2x384xf32> to vector<2x128xf32>
    %273 = vector.extract_strided_slice %263 {offsets = [0, 128], sizes = [2, 128], strides = [1, 1]} : vector<2x384xf32> to vector<2x128xf32>
    %274 = arith.addf %272, %273 : vector<2x128xf32>
    %275 = arith.negf %274 : vector<2x128xf32>
    %276 = math.exp %275 : vector<2x128xf32>
    %cst_66 = arith.constant 1.000000e+00 : f32
    %277 = vector.broadcast %cst_66 : f32 to vector<2x128xf32>
    %278 = arith.addf %277, %276 : vector<2x128xf32>
    %279 = arith.divf %277, %278 : vector<2x128xf32>
    %280 = vector.extract_strided_slice %260 {offsets = [0, 256], sizes = [2, 128], strides = [1, 1]} : vector<2x384xf32> to vector<2x128xf32>
    %281 = vector.extract_strided_slice %263 {offsets = [0, 256], sizes = [2, 128], strides = [1, 1]} : vector<2x384xf32> to vector<2x128xf32>
    %282 = arith.mulf %271, %281 : vector<2x128xf32>
    %283 = arith.addf %280, %282 : vector<2x128xf32>
    %284 = math.tanh %283 : vector<2x128xf32>
    %cst_67 = arith.constant 1.000000e+00 : f32
    %285 = vector.broadcast %cst_67 : f32 to vector<2x128xf32>
    %286 = arith.subf %285, %279 : vector<2x128xf32>
    %287 = arith.mulf %286, %284 : vector<2x128xf32>
    %288 = arith.mulf %279, %253 : vector<2x128xf32>
    %289 = arith.addf %287, %288 : vector<2x128xf32>
    %290 = arith.index_cast %c7_i32 : i32 to index
    %c0_68 = arith.constant 0 : index
    %c0_69 = arith.constant 0 : index
    %291 = vector.load %arg4[%290, %c0_68, %c0_69] : memref<8x2x128xf32, #tpu.memory_space<vmem>>, vector<1x2x128xf32>
    %292 = vector.shape_cast %291 : vector<1x2x128xf32> to vector<2x128xf32>
    %293 = vector.shape_cast %289 : vector<2x128xf32> to vector<1x2x128xf32>
    tpu.vector_store %arg4[%290, %c0_68, %c0_69], %293 {strides = array<i32>} : memref<8x2x128xf32, #tpu.memory_space<vmem>>, vector<1x2x128xf32>,
    %c8_i32 = arith.constant 8 : i32
    %c0_70 = arith.constant 0 : index
    %c0_71 = arith.constant 0 : index
    %294 = vector.load %arg5[%c0_70, %c0_71] : memref<2x128xf32, #tpu.memory_space<vmem>>, vector<2x128xf32>
    tpu.vector_store %arg5[%c0_70, %c0_71], %289 {strides = array<i32>} : memref<2x128xf32, #tpu.memory_space<vmem>>, vector<2x128xf32>,
    return
  }
  func.func @transform_0(%arg0: i32) -> (i32, i32, i32) {
    %c0_i32 = arith.constant 0 : i32
    %c0_i32_0 = arith.constant 0 : i32
    %c0_i32_1 = arith.constant 0 : i32
    return %arg0, %c0_i32, %c0_i32_0 : i32, i32, i32
  }
  func.func @transform_1(%arg0: i32) -> (i32, i32) {
    %c0_i32 = arith.constant 0 : i32
    %c0_i32_0 = arith.constant 0 : i32
    %c0_i32_1 = arith.constant 0 : i32
    return %c0_i32, %c0_i32_0 : i32, i32
  }
  func.func @transform_2(%arg0: i32) -> (i32, i32) {
    %c0_i32 = arith.constant 0 : i32
    %c0_i32_0 = arith.constant 0 : i32
    %c0_i32_1 = arith.constant 0 : i32
    return %c0_i32, %c0_i32_0 : i32, i32
  }
  func.func @transform_3(%arg0: i32) -> (i32, i32, i32) {
    %c0_i32 = arith.constant 0 : i32
    %c0_i32_0 = arith.constant 0 : i32
    %c0_i32_1 = arith.constant 0 : i32
    return %arg0, %c0_i32, %c0_i32_0 : i32, i32, i32
  }
}

</mosaic_0001>

<bundles_post_ra>
// kernel: tpu_custom_call.1
= control target key start
LH: loop header
LB: loop body
LE: loop exit
PB: predicated region body
PF: predicated region fallthrough
CT: control target
= control target key end

     0   :  { %8 = vsyncpa [#allocation4], 0  ;;  %s3594_s0 = inlined_call_operand.hbm [shape: f32[16,2,384], index: 0, kind: input, shape index: {}]   ;;  %s3595_s1 = inlined_call_operand.hbm [shape: f32[128,384], index: 1, kind: input, shape index: {}]   ;;  %s3596_s2 = inlined_call_operand.vmem [shape: f32[1,384], index: 2, kind: input, shape index: {}]   ;;  %s3597_s3 = inlined_call_operand.hbm [shape: f32[16,2,128], index: 3, kind: output, shape index: {}]  }
   0x1   :  { %10 = vsyncpa [#allocation4 + $0x1], 0 }
   0x2   :  { %11 = vsyncpa [#allocation7], 0 }
   0x3   :  { %12 = vsyncpa [#allocation5], 0 }
   0x4   :  { %14 = vsyncpa [#allocation5 + $0x1], 0  ;;  %s2966_s12 = smov 0   ;;  %s2968_s13 = smov 0  }
   0x5   :  { %s2970_s14 = smov 0   ;;  %s2972_s15 = smov 0  }
   0x6 LB: > { %s2987_s16 = sadd.s32 4294967295, %s2931_s15   ;;  %s1742_s17 = sadd.s32 4294967294, %s2931_s15   ;;  %s2931_s15 = sphi %s2972_s15, %s3618_s15   ;;  %s2927_s14 = sphi %s2970_s14, %s3617_s14   ;;  %s2923_s13 = sphi %s2968_s13, %s3616_s13   ;;  %s2919_s12 = sphi %s2966_s12, %s3615_s12  }
   0x7   : > { %p40_p0 = scmp.ne.s32.totalorder %s2923_s13, %s2919_s12  ;;  %p3598_p1 = scmp.eq.s32.totalorder %s2987_s16, 0 }
   0x8   : > { %p112_p3 = scmp.eq.s32.totalorder %s1742_s17, 1  ;;  %p1743_p5 = scmp.ge.s32.totalorder %s2931_s15, 1 }
   0x9   : > { %p2996_p4 = por %p3598_p1, %p40_p0  ;;  %p119_p7 = scmp.lt.s32.totalorder %s2931_s15, 3 }
   0xa   : > { %p3001_p6 = por %p112_p3, %p40_p0  ;;  %s2933_s21 = smov [#allocation6]  }
   0xb   : > { %s3601_s18 = scalar_select %p2996_p4, 1, 0 }
   0xc   : > { %s3602_s19 = scalar_select %p3001_p6, 1, 0 }
   0xd   : > { %p3007_p9 = pnand %p1743_p5, %p119_p7  ;;  %s131_s22 = sshll.u32 %s2933_s21, 4  ;;  %s3011_s22 = int_to_ptr.vmem [resolvable:$true] %s131_s22 }
   0xe   : > { %s3023_s24 = sadd.s32 1, %s2931_s15   ;;  %s27_s25 = sadd.s32 1, %s2927_s14 }
   0xf   : > { %s3603_s20 = scalar_select %p3007_p9, 1, 0 }
  0x10   : > { %p2664_p10 = pneg %p3007_p9  ;;  %s24_s26 = ssub.s32 %s2931_s15, %s3023_s24 }
  0x11   : > { %s2803_s29 = scalar_lea.hbm %s3595_s1, 6144 }
  0x12   : > { %p3018_p12 = pnand %p2664_p10, %p3598_p1  ;;  %p2804_p13 = scmp.ne.s32.totalorder %s3595_s1, %s2803_s29 }
  0x13   : > { %p2810_p7 = scmp.lt.u32.totalorder %s2803_s29, %s3595_s1 }
  0x14   : > { %p2805_p0 = pneg %p3018_p12 }
  0x16   : > { %p2806_p3 = pnand %p2805_p0, %p2804_p13 }
  0x18   : > { %p2807_p5 = pneg %p2806_p3 }
  0x1a   : > { %p2812_p10 = pnand %p2810_p7, %p2807_p5 }
  0x1c   : > { %2815 = shalt.err (!%p2812_p10)
}
  0x1d   : > { %s2816_s7 = scalar_lea.vmem %s3011_s22, 6144  ;;  %p2824_p2 = scmp.lt.s32.totalorder %s3011_s22, %s3011_s22 }
  0x1e   : > { %p2817_p11 = scmp.ne.s32.totalorder %s3011_s22, %s2816_s7  ;;  %p2825_p6 = scmp.lt.s32.totalorder %s2816_s7, %s2816_s7 }
  0x20   : > { %p2819_p8 = pnand %p2817_p11, %p2805_p0  ;;  %p2826_p4 = por %p2825_p6, %p2824_p2 }
  0x22   : > { %p2820_p1 = pneg %p2819_p8 }
  0x24   : > { %p2827_p9 = pnand %p2826_p4, %p2820_p1 }
  0x26   : > { %2830 = shalt.err (!%p2827_p9)
}
  0x27   : > { %s2934_s8 = smov 384   ;;  %s2935_s9 = smov 24  }
  0x28   : > { %2667 = dma.hbm_to_vmem [thread:$0]  (!%p3018_p12), %s3595_s1, 6144, %s3011_s22, [#allocation7], %s2934_s8, %s2934_s8, %s2935_s9  }
  0x29   : > { %p25_p2 = scmp.eq.s32.totalorder %s24_s26, 0  ;;  %p34_p1 = scmp.ne.s32.totalorder %s2927_s14, %s2923_s13 }
  0x2a   : > { %p35_p4 = scmp.eq.s32.totalorder %s2931_s15, 0  ;;  %p2677_p6 = scmp.lt.s32.totalorder %s2931_s15, 2 }
  0x2b   : > { %s3054_s17 = scalar_select %p25_p2, %s2927_s14, %s27_s25  }
  0x2c   : > { %p36_p8 = por %p35_p4, %p34_p1  ;;  %p3605_p9 = scmp.eq.s32.totalorder %s2987_s16, 1 }
  0x2d   : > { %s148_s27 = sand.u32 1, %s2927_s14   ;;  %s2654_s28 = smul.u32 768, %s2931_s15 }
  0x2e   : > { %p3058_p11 = por %p3605_p9, %p34_p1  ;;  %s2653_s29 = smul.u32 48, %s148_s27 }
  0x2f   : > { %s3067_s4 = scalar_lea.hbm %s3594_s0, %s2654_s28  ;;  %p3069_p12 = pnand %p2677_p6, %p36_p8 }
  0x30   : > { %s152_s25 = scalar_lea.vmem [#allocation3], %s2653_s29  ;;  %s3075_s5 = scalar_lea.sflag [#allocation4], %s148_s27 }
  0x31   : > { %s160_s26 = sshll.u32 %s152_s25, 4  ;;  %s2831_s6 = scalar_lea.hbm %s3067_s4, 768  ;;  %s3073_s26 = int_to_ptr.vmem [resolvable:$true] %s160_s26 }
  0x32   : > { %p2832_p13 = scmp.ne.s32.totalorder %s3067_s4, %s2831_s6  ;;  %p2833_p0 = pneg %p3069_p12 }
  0x33   : > { %s2836_s9 = scalar_lea.hbm %s3594_s0, 1536  ;;  %p2837_p7 = scmp.lt.u32.totalorder %s3067_s4, %s3594_s0 }
  0x34   : > { %p2834_p3 = pnand %p2833_p0, %p2832_p13  ;;  %p2838_p10 = scmp.lt.u32.totalorder %s2836_s9, %s2831_s6 }
  0x35   : > { %p2840_p1 = scmp.lt.u32.totalorder %s2831_s6, %s3067_s4 }
  0x36   : > { %p2835_p5 = pneg %p2834_p3  ;;  %p2839_p2 = por %p2838_p10, %p2837_p7 }
  0x38   : > { %p2841_p4 = por %p2840_p1, %p2839_p2 }
  0x3a   : > { %p2842_p6 = pnand %p2841_p4, %p2835_p5 }
  0x3c   : > { %2845 = shalt.err (!%p2842_p6)
}
  0x3d   : > { %s2846_s27 = scalar_lea.vmem %s3073_s26, 768  ;;  %s2936_s28 = smov [#allocation3]  }
  0x3e   : > { %p2847_p8 = scmp.ne.s32.totalorder %s3073_s26, %s2846_s27  ;;  %s2851_s29 = sshll.u32 %s2936_s28, 4  ;;  %s2852_s29 = int_to_ptr.vmem [resolvable:$false] %s2851_s29 }
  0x3f   : > { %s2853_s23 = scalar_lea.vmem %s2852_s29, 1536  ;;  %p2854_p3 = scmp.lt.s32.totalorder %s3073_s26, %s2852_s29 }
  0x40   : > { %p2849_p9 = pnand %p2847_p8, %p2833_p0  ;;  %p2855_p7 = scmp.lt.s32.totalorder %s2853_s23, %s2846_s27 }
  0x42   : > { %p2850_p13 = pneg %p2849_p9  ;;  %p2856_p10 = por %p2855_p7, %p2854_p3 }
  0x44   : > { %p2857_p2 = pnand %p2856_p10, %p2850_p13 }
  0x46   : > { %2860 = shalt.err (!%p2857_p2)
}
  0x47   : > { %s2937_s30 = smov 96   ;;  %s2938_s25 = smov 6  }
  0x48   : > { %2671 = dma.hbm_to_vmem [thread:$0]  (!%p3069_p12), %s3067_s4, 768, %s3073_s26, %s3075_s5, %s2937_s30, %s2937_s30, %s2938_s25  }
  0x49   : > { %p3608_p0 = scmp.ne.s32.totalorder %s3603_s20, 0 }
  0x4a   : > { %s3106_s6 = sand.u32 (!%p3608_p0), 1, %s2923_s13   ;;  %p3609_p5 = scmp.ne.s32.totalorder (!%p3608_p0), %s3601_s18, 0 }
  0x4b   : > { %172 = sbr.rel (%p3608_p0) target bundleno = 2233 (0x8b9), region = 32  ;;  %s175_s8 = scalar_lea.sflag (!%p3608_p0), [#allocation4], %s3106_s6 }
  0x4c   : > { %s2655_s7 = smul.u32 (!%p3608_p0), 48, %s3106_s6 }
  0x4e   : > { %s3110_s9 = scalar_lea.vmem (!%p3608_p0), [#allocation3], %s2655_s7 }
  0x52   : > { %2906 = dma.done.wait (%p3609_p5), %s175_s8, 768  }
  0x53   : > { %2908 = vsyncadd (%p3609_p5), %s175_s8, 4294966528  ;;  %p3610_p12 = scmp.eq.s32.totalorder %s2987_s16, 0 }
  0x55   : > { %2910 = dma.done.wait (%p3610_p12), [#allocation7], 6144   ;;  %p3611_p1 = pmov %p3610_p12 }
  0x56   : > { %s1751_s20 = sshll.u32 %s3106_s6, 4  ;;  %p3612_p4 = scmp.ne.s32.totalorder %s2987_s16, 0 }
  0x57   : > { %2912 = vsyncadd (%p3611_p1), [#allocation7], 4294961152  ;;  %s3121_s4 = scalar_lea.vmem [#allocation8], %s1751_s20  ;;  %v2939_v0 = vmov (!%p3612_p4), 0.0  }
  0x58   : > { %210 = sbr.rel (%p3612_p4) target bundleno = 95 (0x5f), region = 44  ;;  %211 = vst [vmem:[#allocation2] sm:$0x3] (!%p3612_p4), %v2939_v0 }
  0x5f PF: > { %v213_v1 = vld [vmem:[#allocation6 + $0x8] sm:$0xff]  ;;  %v216_v2 = vld [vmem:[#allocation6 + $0x20] sm:$0xff]  ;;  %v215_v5 = vld [vmem:[#allocation6 + $0x18] sm:$0xff]  ;;  %v2940_v8 = vmov 0.0|0.0   ;;  %v2941_v9 = vmov 0.0   ;;  %vm2942_vm0 = vmmov 0  }
  0x60   : > { %v212_v3 = vld [vmem:[#allocation6] sm:$0xff]  ;;  %v3125_v4 = vpack.c.bf16 %v216_v2, %v213_v1  ;;  %v219_v6 = vld [vmem:[#allocation6 + $0x38] sm:$0xff]  ;;  %v222_v7 = vld [vmem:[#allocation6 + $0x50] sm:$0xff]  ;;  %2237 = vmatprep.subr.bf16.mxu1 %v2940_v8  ;;  %343 = vmatprep.mubr.f32.mxu0 %v2941_v9  ;;  %s1788_s26 = sshll.u32 %s2987_s16, 8  ;;  %s1659_s5 = sshll.u32 %s3121_s4, 4  ;;  %s3549_s5 = int_to_ptr.vmem [resolvable:$true] %s1659_s5 }
  0x61   : > { %v3129_v10 = vpack.c.bf16 %v215_v5, %v212_v3  ;;  %v3131_v11 = vpack.c.bf16 %v222_v7, %v219_v6  ;;  %v218_v12 = vld [vmem:[#allocation6 + $0x30] sm:$0xff]  ;;  %v221_v13 = vld [vmem:[#allocation6 + $0x48] sm:$0xff]  ;;  %1957 = vmatprep.mubr.msk.f32.mxu1 %vm2942_vm0, %v2941_v9  ;;  %v228_v15 = vld [vmem:[#allocation6 + $0x80] sm:$0xff]  ;;  %s3547_s27 = scalar_lea.hbm %s3597_s3, %s1788_s26  ;;  %s1646_s28 = scalar_lea.sflag [#allocation5], %s3106_s6 }
  0x62   : > { %v225_v14 = vld [vmem:[#allocation6 + $0x68] sm:$0xff]  ;;  %2206 = vmatprep.subr.bf16.mxu0 %v3125_v4  ;;  %v3137_v16 = vpack.c.bf16 %v221_v13, %v218_v12  ;;  %v224_v18 = vld [vmem:[#allocation6 + $0x60] sm:$0xff]  ;;  %v227_v19 = vld [vmem:[#allocation6 + $0x78] sm:$0xff]  ;;  %s2861_s29 = scalar_lea.vmem %s3549_s5, 256  ;;  %s2943_s16 = smov [#allocation8]  }
  0x63   : > { %2208 = vmatpush1.bf16.msra.mxu0 %v3129_v10  ;;  %v3140_v17 = vpack.c.bf16 %v228_v15, %v225_v14  ;;  %v231_v20 = vld [vmem:[#allocation6 + $0x98] sm:$0xff]  ;;  %v234_v21 = vld [vmem:[#allocation6 + $0xb0] sm:$0xff]  ;;  %v3143_v22 = vpack.c.bf16 %v227_v19, %v224_v18  ;;  %v233_v25 = vld [vmem:[#allocation6 + $0xa8] sm:$0xff]  ;;  %v264_v19 = vlaneseq  ;;  %p2862_p6 = scmp.ne.s32.totalorder %s3549_s5, %s2861_s29  ;;  %s2865_s23 = sshll.u32 %s2943_s16, 4  ;;  %s2866_s23 = int_to_ptr.vmem [resolvable:$false] %s2865_s23 }
  0x64   : > { %2210 = vmatprep.subr.bf16.mxu0 %v3131_v11  ;;  %v3146_v23 = vpack.c.bf16 %v234_v21, %v231_v20  ;;  %v230_v24 = vld [vmem:[#allocation6 + $0x90] sm:$0xff]  ;;  %v237_v26 = vld [vmem:[#allocation6 + $0xc8] sm:$0xff]  ;;  %v240_v27 = vld [vmem:[#allocation6 + $0xe0] sm:$0xff]  ;;  %s2867_s30 = scalar_lea.vmem %s2866_s23, 512  ;;  %p2868_p13 = scmp.lt.s32.totalorder %s3549_s5, %s2866_s23 }
  0x65   : > { %v214_v28 = vld [vmem:[#allocation6 + $0x10] sm:$0xff]  ;;  %v217_v29 = vld [vmem:[#allocation6 + $0x28] sm:$0xff]  ;;  %v220_v31 = vld [vmem:[#allocation6 + $0x40] sm:$0xff]  ;;  %v3151_v32 = vpack.c.bf16 %v233_v25, %v230_v24  ;;  %v3154_v34 = vpack.c.bf16 %v240_v27, %v237_v26  ;;  %v265_v20 = vshrl.u32 %v264_v19, 7  ;;  %p2863_p8 = pnand %p2862_p6, %p3058_p11  ;;  %p2869_p3 = scmp.lt.s32.totalorder %s2867_s30, %s2861_s29 }
  0x66   : > { %v3148_v30 = vpack.c.bf16 %v217_v29, %v214_v28  ;;  %v223_v33 = vld [vmem:[#allocation6 + $0x58] sm:$0xff]  ;;  %v236_v35 = vld [vmem:[#allocation6 + $0xc0] sm:$0xff]  ;;  %v246_v39 = vld [vmem:[#allocation6 + $0x110] sm:$0xff] }
  0x67   : > { %2212 = vmatpush1.bf16.msra.mxu0 %v3137_v16  ;;  %v239_v36 = vld [vmem:[#allocation6 + $0xd8] sm:$0xff]  ;;  %v3157_v38 = vpack.c.bf16 %v223_v33, %v220_v31  ;;  %v226_v40 = vld [vmem:[#allocation6 + $0x70] sm:$0xff]  ;;  %v229_v41 = vld [vmem:[#allocation6 + $0x88] sm:$0xff]  ;;  %v266_v21 = vsub.s32 0, %v265_v20  ;;  %v270_v25 = vsub.s32 1, %v265_v20  ;;  %p2864_p9 = pneg %p2863_p8  ;;  %p2870_p7 = por %p2869_p3, %p2868_p13 }
  0x68   : > { %2214 = vmatprep.subr.bf16.mxu0 %v3140_v17  ;;  %v243_v37 = vld [vmem:[#allocation6 + $0xf8] sm:$0xff]  ;;  %2239 = vmatpush3.bf16.msra.mxu1 %v3148_v30  ;;  %v3161_v42 = vpack.c.bf16 %v239_v36, %v236_v35  ;;  %v242_v44 = vld [vmem:[#allocation6 + $0xf0] sm:$0xff]  ;;  %v245_v45 = vld [vmem:[#allocation6 + $0x108] sm:$0xff]  ;;  %v3167_v47 = vpack.c.bf16 %v229_v41, %v226_v40 }
  0x69   : > { %2240 = vmatprep.subr.bf16.mxu1 %v2940_v8  ;;  %v3164_v43 = vpack.c.bf16 %v246_v39, %v243_v37  ;;  %v249_v46 = vld [vmem:[#allocation6 + $0x128] sm:$0xff]  ;;  %v252_v48 = vld [vmem:[#allocation6 + $0x140] sm:$0xff]  ;;  %v235_v50 = vld [vmem:[#allocation6 + $0xb8] sm:$0xff]  ;;  %v3171_v51 = vpack.c.bf16 %v245_v45, %v242_v44  ;;  %p2871_p10 = pnand %p2870_p7, %p2864_p9 }
  0x6a   : > { %v232_v49 = vld [vmem:[#allocation6 + $0xa0] sm:$0xff]  ;;  %v3174_v52 = vpack.c.bf16 %v252_v48, %v249_v46  ;;  %v251_v54 = vld [vmem:[#allocation6 + $0x138] sm:$0xff]  ;;  %v258_v57 = vld [vmem:[#allocation6 + $0x170] sm:$0xff] }
  0x6b   : > { %2216 = vmatpush1.bf16.msra.mxu0 %v3143_v22  ;;  %v248_v53 = vld [vmem:[#allocation6 + $0x120] sm:$0xff]  ;;  %v255_v55 = vld [vmem:[#allocation6 + $0x158] sm:$0xff]  ;;  %v3177_v56 = vpack.c.bf16 %v235_v50, %v232_v49  ;;  %v238_v58 = vld [vmem:[#allocation6 + $0xd0] sm:$0xff]  ;;  %v274_v49 = vsub.s32 2, %v265_v20 }
  0x6c   : > { %2218 = vmatprep.subr.bf16.mxu0 %v3146_v23  ;;  %2242 = vmatpush3.bf16.msra.mxu1 %v3157_v38  ;;  %v241_v59 = vld [vmem:[#allocation6 + $0xe8] sm:$0xff]  ;;  %v3181_v60 = vpack.c.bf16 %v251_v54, %v248_v53  ;;  %v3184_v61 = vpack.c.bf16 %v258_v57, %v255_v55  ;;  %v254_v62 = vld [vmem:[#allocation6 + $0x150] sm:$0xff]  ;;  %v244_v1 = vld [vmem:[#allocation6 + $0x100] sm:$0xff] }
  0x6d   : > { %2243 = vmatprep.subr.bf16.mxu1 %v2940_v8  ;;  %v257_v63 = vld [vmem:[#allocation6 + $0x168] sm:$0xff]  ;;  %v3187_v0 = vpack.c.bf16 %v241_v59, %v238_v58  ;;  %v247_v2 = vld [vmem:[#allocation6 + $0x118] sm:$0xff]  ;;  %v250_v6 = vld [vmem:[#allocation6 + $0x130] sm:$0xff] }
  0x6e   : > { %v3191_v3 = vpack.c.bf16 %v257_v63, %v254_v62  ;;  %v3195_v5 = vpack.c.bf16 %v247_v2, %v244_v1  ;;  %v253_v7 = vld [vmem:[#allocation6 + $0x148] sm:$0xff]  ;;  %v3199_v12 = vld [vmem:[#allocation2] sm:$0x3]  ;;  %v256_v14 = vld [vmem:[#allocation6 + $0x160] sm:$0xff] }
  0x6f   : > { %2220 = vmatpush1.bf16.msra.mxu0 %v3151_v32  ;;  %v3202_v13 = vpack.c.bf16 %v253_v7, %v250_v6  ;;  %v259_v15 = vld [vmem:[#allocation6 + $0x178] sm:$0xff]  ;;  %v262_v28 = vld [vmem:[%s3110_s9] sm:$0x3f] }
  0x70   : > { %2222 = vmatprep.subr.bf16.mxu0 %v3154_v34  ;;  %2245 = vmatpush3.bf16.msra.mxu1 %v3167_v47  ;;  %v3210_v18 = vpack.c.bf16 %v259_v15, %v256_v14  ;;  %v260_v24 = vld [vmem:[%s3596_s2] sm:$0x7]  ;;  %v428_v36 = vrot.slane %v262_v28, 2  ;;  %v438_v57 = vrot.slane %v262_v28, 4 }
  0x71   : > { %2246 = vmatprep.subr.bf16.mxu1 %v2940_v8  ;;  %v3252_v26 = vrot.slane %v260_v24, %v266_v21  ;;  %v3254_v27 = vrot.slane %v260_v24, %v270_v25  ;;  %v3259_v50 = vrot.slane %v260_v24, %v274_v49 }
  0x73   : > { %2224 = vmatpush1.bf16.msra.mxu0 %v3161_v42 }
  0x74   : > { %2226 = vmatprep.subr.bf16.mxu0 %v3164_v43  ;;  %2248 = vmatpush3.bf16.msra.mxu1 %v3177_v56 }
  0x75   : > { %2249 = vmatprep.subr.bf16.mxu1 %v2940_v8 }
  0x77   : > { %2228 = vmatpush1.bf16.msra.mxu0 %v3171_v51 }
  0x78   : > { %2230 = vmatprep.subr.bf16.mxu0 %v3174_v52  ;;  %2251 = vmatpush3.bf16.msra.mxu1 %v3187_v0 }
  0x79   : > { %2252 = vmatprep.subr.bf16.mxu1 %v2940_v8 }
  0x7b   : > { %2232 = vmatpush1.bf16.msra.mxu0 %v3181_v60 }
  0x7c   : > { %2234 = vmatprep.subr.bf16.mxu0 %v3184_v61  ;;  %2254 = vmatpush3.bf16.msra.mxu1 %v3195_v5 }
  0x7d   : > { %2255 = vmatprep.subr.bf16.mxu1 %v2940_v8 }
  0x7f   : > { %2236 = vmatpush1.bf16.msra.mxu0 %v3191_v3 }
  0x80   : > { %2262 = vmatprep.subr.bf16.mxu0 %v3125_v4  ;;  %2257 = vmatpush3.bf16.msra.mxu1 %v3202_v13 }
  0x81   : > { %2258 = vmatprep.subr.bf16.mxu1 %v2940_v8 }
  0x82   : > { %344 = vmatmul.mubr.f32.vlgmr.msra.gmra.mrb[0].mxu0 %v3199_v12 }
  0x83   : > { %2264 = vmatpush1.bf16.msra.mxu0 %v3129_v10  ;;  %513 = vmatprep.mubr.f32.mxu0 %v2941_v9 }
  0x84   : > { %2266 = vmatprep.subr.bf16.mxu0 %v3131_v11  ;;  %2260 = vmatpush3.bf16.msra.mxu1 %v3210_v18 }
  0x85   : > { %2293 = vmatprep.subr.bf16.mxu1 %v2940_v8 }
  0x87   : > { %2268 = vmatpush1.bf16.msra.mxu0 %v3137_v16  ;;  %1958 = vmatmul.mubr.f32.vlgmr.msra.gmra.mrb[0].mxu1 %v3199_v12 }
  0x88   : > { %2270 = vmatprep.subr.bf16.mxu0 %v3140_v17  ;;  %2295 = vmatpush3.bf16.msra.mxu1 %v3148_v30 }
  0x89   : > { %2296 = vmatprep.subr.bf16.mxu1 %v2940_v8  ;;  %1992 = vmatprep.mubr.msk.f32.mxu1 %vm2942_vm0, %v2941_v9 }
  0x8b   : > { %2272 = vmatpush1.bf16.msra.mxu0 %v3143_v22 }
  0x8c   : > { %2274 = vmatprep.subr.bf16.mxu0 %v3146_v23  ;;  %2298 = vmatpush3.bf16.msra.mxu1 %v3157_v38 }
  0x8d   : > { %2299 = vmatprep.subr.bf16.mxu1 %v2940_v8 }
  0x8f   : > { %2276 = vmatpush1.bf16.msra.mxu0 %v3151_v32 }
  0x90   : > { %2278 = vmatprep.subr.bf16.mxu0 %v3154_v34  ;;  %2301 = vmatpush3.bf16.msra.mxu1 %v3167_v47 }
  0x91   : > { %2302 = vmatprep.subr.bf16.mxu1 %v2940_v8 }
  0x93   : > { %2280 = vmatpush1.bf16.msra.mxu0 %v3161_v42 }
  0x94   : > { %2282 = vmatprep.subr.bf16.mxu0 %v3164_v43  ;;  %2304 = vmatpush3.bf16.msra.mxu1 %v3177_v56 }
  0x95   : > { %2305 = vmatprep.subr.bf16.mxu1 %v2940_v8 }
  0x97   : > { %2284 = vmatpush1.bf16.msra.mxu0 %v3171_v51 }
  0x98   : > { %2286 = vmatprep.subr.bf16.mxu0 %v3174_v52  ;;  %2307 = vmatpush3.bf16.msra.mxu1 %v3187_v0 }
  0x99   : > { %2308 = vmatprep.subr.bf16.mxu1 %v2940_v8 }
  0x9b   : > { %2288 = vmatpush1.bf16.msra.mxu0 %v3181_v60 }
  0x9c   : > { %2290 = vmatprep.subr.bf16.mxu0 %v3184_v61  ;;  %2310 = vmatpush3.bf16.msra.mxu1 %v3195_v5 }
  0x9d   : > { %2311 = vmatprep.subr.bf16.mxu1 %v2940_v8 }
  0x9f   : > { %2292 = vmatpush1.bf16.msra.mxu0 %v3191_v3 }
  0xa0   : > { %2318 = vmatprep.subr.bf16.mxu0 %v3125_v4  ;;  %2313 = vmatpush3.bf16.msra.mxu1 %v3202_v13 }
  0xa1   : > { %2314 = vmatprep.subr.bf16.mxu1 %v2940_v8 }
  0xa4   : > { %2316 = vmatpush3.bf16.msra.mxu1 %v3210_v18 }
  0xa5   : > { %2349 = vmatprep.subr.bf16.mxu1 %v2940_v8 }
 0x155   : > { %v345_v29 = vpop.f32.mrb[0].mxu0 }
 0x156   : > { %v346_v31 = vadd.f32 %v345_v29, %v3252_v26  ;;  %v347_v33 = vpop.f32.mrb[1].mxu0 }
 0x157   : > { %v348_v35 = vadd.f32 %v347_v33, %v3254_v27 }
 0x158   : > { %v420_v37 = vadd.f32 %v346_v31, %v262_v28 }
 0x159   : > { %v430_v40 = vadd.f32 %v428_v36, %v348_v35 }
 0x15a   : > { %v1753_v39 = vmul.f32 -1.442695, %v420_v37  ;;  %v416_v41 = vpop.f32.mrb[0].mxu1 }
 0x15b   : > { %v1754_v44 = vmul.f32 -1.442695, %v430_v40  ;;  %v1959_v45 = vpop.f32.mrb[1].mxu1  ;;  %v417_v55 = vadd.f32 %v416_v41, %v3259_v50 }
 0x15c   : > { %2723 = vpow2.f32 %v1753_v39 }
 0x15d   : > { %2725 = vpow2.f32 %v1754_v44 }
 0x166   : > { %v2724_v46 = vpop.eup %2723 }
 0x167   : > { %v424_v48 = vadd.f32 1.0, %v2724_v46  ;;  %v2726_v53 = vpop.eup %2725 }
 0x168   : > { %v434_v54 = vadd.f32 1.0, %v2726_v53 }
 0x169   : > { %2727 = vrcp.f32 %v424_v48 }
 0x16a   : > { %2729 = vrcp.f32 %v434_v54 }
 0x173   : > { %v2728_v58 = vpop.eup %2727 }
 0x174   : > { %v437_v59 = vmul.f32 %v2728_v58, %v417_v55  ;;  %v2730_v63 = vpop.eup %2729 }
 0x175   : > { %v442_v1 = vsub.f32 1.0, %v2730_v63  ;;  %v444_v7 = vmul.f32 %v2730_v63, %v3199_v12  ;;  %v1755_v12 = vld [vmem:[%s3110_s9 + $0x6] sm:$0x3f] }
 0x176   : > { %v440_v62 = vadd.f32 %v438_v57, %v437_v59  ;;  %v598_v28 = vrot.slane %v1755_v12, 2  ;;  %v608_v44 = vrot.slane %v1755_v12, 4  ;;  %v1759_v59 = vld [vmem:[%s3110_s9 + $0xc] sm:$0x3f] }
 0x178   : > { %2731 = vtanh.f32 %v440_v62 }
 0x182   : > { %v2732_v2 = vpop.eup %2731 }
 0x183   : > { %v443_v6 = vmul.f32 %v2732_v2, %v442_v1 }
 0x185   : > { %v3263_v14 = vadd.f32 %v444_v7, %v443_v6 }
 0x187   : > { %446 = vst [vmem:[%s3121_s4] sm:$0x3] %v3263_v14  ;;  %514 = vmatmul.mubr.f32.vlgmr.msra.gmra.mrb[2].mxu0 %v3263_v14  ;;  %1993 = vmatmul.mubr.f32.vlgmr.msra.gmra.mrb[2].mxu1 %v3263_v14 }
 0x188   : > { %2320 = vmatpush1.bf16.msra.mxu0 %v3129_v10  ;;  %2351 = vmatpush3.bf16.msra.mxu1 %v3148_v30 }
 0x189   : > { %2322 = vmatprep.subr.bf16.mxu0 %v3131_v11  ;;  %2352 = vmatprep.subr.bf16.mxu1 %v2940_v8 }
 0x18a   : > { %684 = vmatprep.mubr.f32.mxu0 %v2941_v9  ;;  %2027 = vmatprep.mubr.msk.f32.mxu1 %vm2942_vm0, %v2941_v9 }
 0x18c   : > { %2324 = vmatpush1.bf16.msra.mxu0 %v3137_v16  ;;  %2354 = vmatpush3.bf16.msra.mxu1 %v3157_v38 }
 0x18d   : > { %2326 = vmatprep.subr.bf16.mxu0 %v3140_v17  ;;  %2355 = vmatprep.subr.bf16.mxu1 %v2940_v8 }
 0x190   : > { %2328 = vmatpush1.bf16.msra.mxu0 %v3143_v22  ;;  %2357 = vmatpush3.bf16.msra.mxu1 %v3167_v47 }
 0x191   : > { %2330 = vmatprep.subr.bf16.mxu0 %v3146_v23  ;;  %2358 = vmatprep.subr.bf16.mxu1 %v2940_v8 }
 0x194   : > { %2332 = vmatpush1.bf16.msra.mxu0 %v3151_v32  ;;  %2360 = vmatpush3.bf16.msra.mxu1 %v3177_v56 }
 0x195   : > { %2334 = vmatprep.subr.bf16.mxu0 %v3154_v34  ;;  %2361 = vmatprep.subr.bf16.mxu1 %v2940_v8 }
 0x198   : > { %2336 = vmatpush1.bf16.msra.mxu0 %v3161_v42  ;;  %2363 = vmatpush3.bf16.msra.mxu1 %v3187_v0 }
 0x199   : > { %2338 = vmatprep.subr.bf16.mxu0 %v3164_v43  ;;  %2364 = vmatprep.subr.bf16.mxu1 %v2940_v8 }
 0x19c   : > { %2340 = vmatpush1.bf16.msra.mxu0 %v3171_v51  ;;  %2366 = vmatpush3.bf16.msra.mxu1 %v3195_v5 }
 0x19d   : > { %2342 = vmatprep.subr.bf16.mxu0 %v3174_v52  ;;  %2367 = vmatprep.subr.bf16.mxu1 %v2940_v8 }
 0x1a0   : > { %2344 = vmatpush1.bf16.msra.mxu0 %v3181_v60  ;;  %2369 = vmatpush3.bf16.msra.mxu1 %v3202_v13 }
 0x1a1   : > { %2346 = vmatprep.subr.bf16.mxu0 %v3184_v61  ;;  %2370 = vmatprep.subr.bf16.mxu1 %v2940_v8 }
 0x1a4   : > { %2348 = vmatpush1.bf16.msra.mxu0 %v3191_v3  ;;  %2372 = vmatpush3.bf16.msra.mxu1 %v3210_v18 }
 0x1a5   : > { %2374 = vmatprep.subr.bf16.mxu0 %v3125_v4  ;;  %2405 = vmatprep.subr.bf16.mxu1 %v2940_v8 }
 0x25a   : > { %v515_v15 = vpop.f32.mrb[2].mxu0  ;;  %v586_v19 = vpop.f32.mrb[2].mxu1 }
 0x25b   : > { %v516_v20 = vadd.f32 %v515_v15, %v3252_v26  ;;  %v517_v21 = vpop.f32.mrb[3].mxu0  ;;  %v1994_v24 = vpop.f32.mrb[3].mxu1  ;;  %v587_v41 = vadd.f32 %v586_v19, %v3259_v50 }
 0x25c   : > { %v518_v25 = vadd.f32 %v517_v21, %v3254_v27 }
 0x25d   : > { %v590_v29 = vadd.f32 %v1755_v12, %v516_v20 }
 0x25e   : > { %v600_v33 = vadd.f32 %v598_v28, %v518_v25 }
 0x25f   : > { %v1756_v31 = vmul.f32 -1.442695, %v590_v29 }
 0x260   : > { %v1757_v35 = vmul.f32 -1.442695, %v600_v33 }
 0x261   : > { %2733 = vpow2.f32 %v1756_v31  ;;  %v779_v31 = vrot.slane %v1759_v59, 4 }
 0x262   : > { %2735 = vpow2.f32 %v1757_v35 }
 0x26b   : > { %v2734_v36 = vpop.eup %2733 }
 0x26c   : > { %v594_v37 = vadd.f32 1.0, %v2734_v36  ;;  %v2736_v39 = vpop.eup %2735 }
 0x26d   : > { %v604_v40 = vadd.f32 1.0, %v2736_v39 }
 0x26e   : > { %2737 = vrcp.f32 %v594_v37 }
 0x26f   : > { %2739 = vrcp.f32 %v604_v40 }
 0x278   : > { %v2738_v45 = vpop.eup %2737 }
 0x279   : > { %v607_v46 = vmul.f32 %v2738_v45, %v587_v41  ;;  %v2740_v49 = vpop.eup %2739 }
 0x27a   : > { %v612_v53 = vsub.f32 1.0, %v2740_v49  ;;  %v614_v57 = vmul.f32 %v2740_v49, %v3263_v14  ;;  %v769_v14 = vrot.slane %v1759_v59, 2 }
 0x27b   : > { %v610_v48 = vadd.f32 %v608_v44, %v607_v46  ;;  %v1763_v46 = vld [vmem:[%s3110_s9 + $0x12] sm:$0x3f] }
 0x27d   : > { %2741 = vtanh.f32 %v610_v48 }
 0x287   : > { %v2742_v54 = vpop.eup %2741 }
 0x288   : > { %v613_v55 = vmul.f32 %v2742_v54, %v612_v53 }
 0x28a   : > { %v3309_v58 = vadd.f32 %v614_v57, %v613_v55 }
 0x28c   : > { %1758 = vst [vmem:[%s3121_s4 + $0x2] sm:$0x3] %v3309_v58  ;;  %685 = vmatmul.mubr.f32.vlgmr.msra.gmra.mrb[4].mxu0 %v3309_v58  ;;  %2028 = vmatmul.mubr.f32.vlgmr.msra.gmra.mrb[4].mxu1 %v3309_v58 }
 0x28d   : > { %2376 = vmatpush1.bf16.msra.mxu0 %v3129_v10  ;;  %2407 = vmatpush3.bf16.msra.mxu1 %v3148_v30 }
 0x28e   : > { %2378 = vmatprep.subr.bf16.mxu0 %v3131_v11  ;;  %2408 = vmatprep.subr.bf16.mxu1 %v2940_v8 }
 0x28f   : > { %855 = vmatprep.mubr.f32.mxu0 %v2941_v9  ;;  %2062 = vmatprep.mubr.msk.f32.mxu1 %vm2942_vm0, %v2941_v9 }
 0x291   : > { %2380 = vmatpush1.bf16.msra.mxu0 %v3137_v16  ;;  %2410 = vmatpush3.bf16.msra.mxu1 %v3157_v38 }
 0x292   : > { %2382 = vmatprep.subr.bf16.mxu0 %v3140_v17  ;;  %2411 = vmatprep.subr.bf16.mxu1 %v2940_v8 }
 0x295   : > { %2384 = vmatpush1.bf16.msra.mxu0 %v3143_v22  ;;  %2413 = vmatpush3.bf16.msra.mxu1 %v3167_v47 }
 0x296   : > { %2386 = vmatprep.subr.bf16.mxu0 %v3146_v23  ;;  %2414 = vmatprep.subr.bf16.mxu1 %v2940_v8 }
 0x299   : > { %2388 = vmatpush1.bf16.msra.mxu0 %v3151_v32  ;;  %2416 = vmatpush3.bf16.msra.mxu1 %v3177_v56 }
 0x29a   : > { %2390 = vmatprep.subr.bf16.mxu0 %v3154_v34  ;;  %2417 = vmatprep.subr.bf16.mxu1 %v2940_v8 }
 0x29d   : > { %2392 = vmatpush1.bf16.msra.mxu0 %v3161_v42  ;;  %2419 = vmatpush3.bf16.msra.mxu1 %v3187_v0 }
 0x29e   : > { %2394 = vmatprep.subr.bf16.mxu0 %v3164_v43  ;;  %2420 = vmatprep.subr.bf16.mxu1 %v2940_v8 }
 0x2a1   : > { %2396 = vmatpush1.bf16.msra.mxu0 %v3171_v51  ;;  %2422 = vmatpush3.bf16.msra.mxu1 %v3195_v5 }
 0x2a2   : > { %2398 = vmatprep.subr.bf16.mxu0 %v3174_v52  ;;  %2423 = vmatprep.subr.bf16.mxu1 %v2940_v8 }
 0x2a5   : > { %2400 = vmatpush1.bf16.msra.mxu0 %v3181_v60  ;;  %2425 = vmatpush3.bf16.msra.mxu1 %v3202_v13 }
 0x2a6   : > { %2402 = vmatprep.subr.bf16.mxu0 %v3184_v61  ;;  %2426 = vmatprep.subr.bf16.mxu1 %v2940_v8 }
 0x2a9   : > { %2404 = vmatpush1.bf16.msra.mxu0 %v3191_v3  ;;  %2428 = vmatpush3.bf16.msra.mxu1 %v3210_v18 }
 0x2aa   : > { %2430 = vmatprep.subr.bf16.mxu0 %v3125_v4  ;;  %2461 = vmatprep.subr.bf16.mxu1 %v2940_v8 }
 0x35f   : > { %v686_v62 = vpop.f32.mrb[4].mxu0  ;;  %v757_v63 = vpop.f32.mrb[4].mxu1 }
 0x360   : > { %v687_v1 = vadd.f32 %v686_v62, %v3252_v26  ;;  %v688_v2 = vpop.f32.mrb[5].mxu0  ;;  %v2029_v6 = vpop.f32.mrb[5].mxu1  ;;  %v758_v29 = vadd.f32 %v757_v63, %v3259_v50 }
 0x361   : > { %v689_v7 = vadd.f32 %v688_v2, %v3254_v27 }
 0x362   : > { %v761_v12 = vadd.f32 %v1759_v59, %v687_v1 }
 0x363   : > { %v771_v19 = vadd.f32 %v769_v14, %v689_v7 }
 0x364   : > { %v1760_v15 = vmul.f32 -1.442695, %v761_v12 }
 0x365   : > { %v1761_v20 = vmul.f32 -1.442695, %v771_v19 }
 0x366   : > { %2743 = vpow2.f32 %v1760_v15  ;;  %v950_v15 = vrot.slane %v1763_v46, 4 }
 0x367   : > { %2745 = vpow2.f32 %v1761_v20 }
 0x370   : > { %v2744_v21 = vpop.eup %2743 }
 0x371   : > { %v765_v24 = vadd.f32 1.0, %v2744_v21  ;;  %v2746_v25 = vpop.eup %2745 }
 0x372   : > { %v775_v28 = vadd.f32 1.0, %v2746_v25 }
 0x373   : > { %2747 = vrcp.f32 %v765_v24 }
 0x374   : > { %2749 = vrcp.f32 %v775_v28 }
 0x37d   : > { %v2748_v33 = vpop.eup %2747 }
 0x37e   : > { %v778_v35 = vmul.f32 %v2748_v33, %v758_v29  ;;  %v2750_v37 = vpop.eup %2749 }
 0x37f   : > { %v783_v39 = vsub.f32 1.0, %v2750_v37  ;;  %v785_v44 = vmul.f32 %v2750_v37, %v3309_v58  ;;  %v940_v58 = vrot.slane %v1763_v46, 2 }
 0x380   : > { %v781_v36 = vadd.f32 %v779_v31, %v778_v35  ;;  %v1767_v35 = vld [vmem:[%s3110_s9 + $0x18] sm:$0x3f] }
 0x382   : > { %2751 = vtanh.f32 %v781_v36 }
 0x38c   : > { %v2752_v40 = vpop.eup %2751 }
 0x38d   : > { %v784_v41 = vmul.f32 %v2752_v40, %v783_v39 }
 0x38f   : > { %v3355_v45 = vadd.f32 %v785_v44, %v784_v41 }
 0x391   : > { %1762 = vst [vmem:[%s3121_s4 + $0x4] sm:$0x3] %v3355_v45  ;;  %856 = vmatmul.mubr.f32.vlgmr.msra.gmra.mrb[6].mxu0 %v3355_v45  ;;  %2063 = vmatmul.mubr.f32.vlgmr.msra.gmra.mrb[6].mxu1 %v3355_v45 }
 0x392   : > { %2432 = vmatpush1.bf16.msra.mxu0 %v3129_v10  ;;  %2463 = vmatpush3.bf16.msra.mxu1 %v3148_v30 }
 0x393   : > { %2434 = vmatprep.subr.bf16.mxu0 %v3131_v11  ;;  %2464 = vmatprep.subr.bf16.mxu1 %v2940_v8 }
 0x394   : > { %1026 = vmatprep.mubr.f32.mxu0 %v2941_v9  ;;  %2097 = vmatprep.mubr.msk.f32.mxu1 %vm2942_vm0, %v2941_v9 }
 0x396   : > { %2436 = vmatpush1.bf16.msra.mxu0 %v3137_v16  ;;  %2466 = vmatpush3.bf16.msra.mxu1 %v3157_v38 }
 0x397   : > { %2438 = vmatprep.subr.bf16.mxu0 %v3140_v17  ;;  %2467 = vmatprep.subr.bf16.mxu1 %v2940_v8 }
 0x39a   : > { %2440 = vmatpush1.bf16.msra.mxu0 %v3143_v22  ;;  %2469 = vmatpush3.bf16.msra.mxu1 %v3167_v47 }
 0x39b   : > { %2442 = vmatprep.subr.bf16.mxu0 %v3146_v23  ;;  %2470 = vmatprep.subr.bf16.mxu1 %v2940_v8 }
 0x39e   : > { %2444 = vmatpush1.bf16.msra.mxu0 %v3151_v32  ;;  %2472 = vmatpush3.bf16.msra.mxu1 %v3177_v56 }
 0x39f   : > { %2446 = vmatprep.subr.bf16.mxu0 %v3154_v34  ;;  %2473 = vmatprep.subr.bf16.mxu1 %v2940_v8 }
 0x3a2   : > { %2448 = vmatpush1.bf16.msra.mxu0 %v3161_v42  ;;  %2475 = vmatpush3.bf16.msra.mxu1 %v3187_v0 }
 0x3a3   : > { %2450 = vmatprep.subr.bf16.mxu0 %v3164_v43  ;;  %2476 = vmatprep.subr.bf16.mxu1 %v2940_v8 }
 0x3a6   : > { %2452 = vmatpush1.bf16.msra.mxu0 %v3171_v51  ;;  %2478 = vmatpush3.bf16.msra.mxu1 %v3195_v5 }
 0x3a7   : > { %2454 = vmatprep.subr.bf16.mxu0 %v3174_v52  ;;  %2479 = vmatprep.subr.bf16.mxu1 %v2940_v8 }
 0x3aa   : > { %2456 = vmatpush1.bf16.msra.mxu0 %v3181_v60  ;;  %2481 = vmatpush3.bf16.msra.mxu1 %v3202_v13 }
 0x3ab   : > { %2458 = vmatprep.subr.bf16.mxu0 %v3184_v61  ;;  %2482 = vmatprep.subr.bf16.mxu1 %v2940_v8 }
 0x3ae   : > { %2460 = vmatpush1.bf16.msra.mxu0 %v3191_v3  ;;  %2484 = vmatpush3.bf16.msra.mxu1 %v3210_v18 }
 0x3af   : > { %2486 = vmatprep.subr.bf16.mxu0 %v3125_v4  ;;  %2517 = vmatprep.subr.bf16.mxu1 %v2940_v8 }
 0x464   : > { %v857_v48 = vpop.f32.mrb[6].mxu0  ;;  %v928_v49 = vpop.f32.mrb[6].mxu1 }
 0x465   : > { %v858_v53 = vadd.f32 %v857_v48, %v3252_v26  ;;  %v859_v54 = vpop.f32.mrb[7].mxu0  ;;  %v2064_v55 = vpop.f32.mrb[7].mxu1  ;;  %v929_v12 = vadd.f32 %v928_v49, %v3259_v50 }
 0x466   : > { %v860_v57 = vadd.f32 %v859_v54, %v3254_v27 }
 0x467   : > { %v932_v59 = vadd.f32 %v1763_v46, %v858_v53 }
 0x468   : > { %v942_v63 = vadd.f32 %v940_v58, %v860_v57 }
 0x469   : > { %v1764_v62 = vmul.f32 -1.442695, %v932_v59 }
 0x46a   : > { %v1765_v1 = vmul.f32 -1.442695, %v942_v63 }
 0x46b   : > { %2753 = vpow2.f32 %v1764_v62  ;;  %v1121_v62 = vrot.slane %v1767_v35, 4 }
 0x46c   : > { %2755 = vpow2.f32 %v1765_v1 }
 0x475   : > { %v2754_v2 = vpop.eup %2753 }
 0x476   : > { %v936_v6 = vadd.f32 1.0, %v2754_v2  ;;  %v2756_v7 = vpop.eup %2755 }
 0x477   : > { %v946_v14 = vadd.f32 1.0, %v2756_v7 }
 0x478   : > { %2757 = vrcp.f32 %v936_v6 }
 0x479   : > { %2759 = vrcp.f32 %v946_v14 }
 0x482   : > { %v2758_v19 = vpop.eup %2757 }
 0x483   : > { %v949_v20 = vmul.f32 %v2758_v19, %v929_v12  ;;  %v2760_v24 = vpop.eup %2759 }
 0x484   : > { %v954_v25 = vsub.f32 1.0, %v2760_v24  ;;  %v956_v31 = vmul.f32 %v2760_v24, %v3355_v45  ;;  %v1111_v45 = vrot.slane %v1767_v35, 2 }
 0x485   : > { %v952_v21 = vadd.f32 %v950_v15, %v949_v20  ;;  %v1771_v20 = vld [vmem:[%s3110_s9 + $0x1e] sm:$0x3f] }
 0x487   : > { %2761 = vtanh.f32 %v952_v21 }
 0x491   : > { %v2762_v28 = vpop.eup %2761 }
 0x492   : > { %v955_v29 = vmul.f32 %v2762_v28, %v954_v25 }
 0x494   : > { %v3401_v33 = vadd.f32 %v956_v31, %v955_v29 }
 0x496   : > { %1766 = vst [vmem:[%s3121_s4 + $0x6] sm:$0x3] %v3401_v33  ;;  %1027 = vmatmul.mubr.f32.vlgmr.msra.gmra.mrb[8].mxu0 %v3401_v33  ;;  %2098 = vmatmul.mubr.f32.vlgmr.msra.gmra.mrb[8].mxu1 %v3401_v33 }
 0x497   : > { %2488 = vmatpush1.bf16.msra.mxu0 %v3129_v10  ;;  %2519 = vmatpush3.bf16.msra.mxu1 %v3148_v30 }
 0x498   : > { %2490 = vmatprep.subr.bf16.mxu0 %v3131_v11  ;;  %2520 = vmatprep.subr.bf16.mxu1 %v2940_v8 }
 0x499   : > { %1197 = vmatprep.mubr.f32.mxu0 %v2941_v9  ;;  %2132 = vmatprep.mubr.msk.f32.mxu1 %vm2942_vm0, %v2941_v9 }
 0x49b   : > { %2492 = vmatpush1.bf16.msra.mxu0 %v3137_v16  ;;  %2522 = vmatpush3.bf16.msra.mxu1 %v3157_v38 }
 0x49c   : > { %2494 = vmatprep.subr.bf16.mxu0 %v3140_v17  ;;  %2523 = vmatprep.subr.bf16.mxu1 %v2940_v8 }
 0x49f   : > { %2496 = vmatpush1.bf16.msra.mxu0 %v3143_v22  ;;  %2525 = vmatpush3.bf16.msra.mxu1 %v3167_v47 }
 0x4a0   : > { %2498 = vmatprep.subr.bf16.mxu0 %v3146_v23  ;;  %2526 = vmatprep.subr.bf16.mxu1 %v2940_v8 }
 0x4a3   : > { %2500 = vmatpush1.bf16.msra.mxu0 %v3151_v32  ;;  %2528 = vmatpush3.bf16.msra.mxu1 %v3177_v56 }
 0x4a4   : > { %2502 = vmatprep.subr.bf16.mxu0 %v3154_v34  ;;  %2529 = vmatprep.subr.bf16.mxu1 %v2940_v8 }
 0x4a7   : > { %2504 = vmatpush1.bf16.msra.mxu0 %v3161_v42  ;;  %2531 = vmatpush3.bf16.msra.mxu1 %v3187_v0 }
 0x4a8   : > { %2506 = vmatprep.subr.bf16.mxu0 %v3164_v43  ;;  %2532 = vmatprep.subr.bf16.mxu1 %v2940_v8 }
 0x4ab   : > { %2508 = vmatpush1.bf16.msra.mxu0 %v3171_v51  ;;  %2534 = vmatpush3.bf16.msra.mxu1 %v3195_v5 }
 0x4ac   : > { %2510 = vmatprep.subr.bf16.mxu0 %v3174_v52  ;;  %2535 = vmatprep.subr.bf16.mxu1 %v2940_v8 }
 0x4af   : > { %2512 = vmatpush1.bf16.msra.mxu0 %v3181_v60  ;;  %2537 = vmatpush3.bf16.msra.mxu1 %v3202_v13 }
 0x4b0   : > { %2514 = vmatprep.subr.bf16.mxu0 %v3184_v61  ;;  %2538 = vmatprep.subr.bf16.mxu1 %v2940_v8 }
 0x4b3   : > { %2516 = vmatpush1.bf16.msra.mxu0 %v3191_v3  ;;  %2540 = vmatpush3.bf16.msra.mxu1 %v3210_v18 }
 0x4b4   : > { %2542 = vmatprep.subr.bf16.mxu0 %v3125_v4  ;;  %2573 = vmatprep.subr.bf16.mxu1 %v2940_v8 }
 0x569   : > { %v1028_v36 = vpop.f32.mrb[8].mxu0  ;;  %v1099_v37 = vpop.f32.mrb[8].mxu1 }
 0x56a   : > { %v1029_v39 = vadd.f32 %v1028_v36, %v3252_v26  ;;  %v1030_v40 = vpop.f32.mrb[9].mxu0  ;;  %v2099_v41 = vpop.f32.mrb[9].mxu1  ;;  %v1100_v59 = vadd.f32 %v1099_v37, %v3259_v50 }
 0x56b   : > { %v1031_v44 = vadd.f32 %v1030_v40, %v3254_v27 }
 0x56c   : > { %v1103_v46 = vadd.f32 %v1767_v35, %v1029_v39 }
 0x56d   : > { %v1113_v49 = vadd.f32 %v1111_v45, %v1031_v44 }
 0x56e   : > { %v1768_v48 = vmul.f32 -1.442695, %v1103_v46  ;;  %v1292_v46 = vrot.slane %v1771_v20, 4 }
 0x56f   : > { %v1769_v53 = vmul.f32 -1.442695, %v1113_v49 }
 0x570   : > { %2763 = vpow2.f32 %v1768_v48 }
 0x571   : > { %2765 = vpow2.f32 %v1769_v53 }
 0x57a   : > { %v2764_v54 = vpop.eup %2763 }
 0x57b   : > { %v1107_v55 = vadd.f32 1.0, %v2764_v54  ;;  %v2766_v57 = vpop.eup %2765 }
 0x57c   : > { %v1117_v58 = vadd.f32 1.0, %v2766_v57 }
 0x57d   : > { %2767 = vrcp.f32 %v1107_v55 }
 0x57e   : > { %2769 = vrcp.f32 %v1117_v58 }
 0x587   : > { %v2768_v63 = vpop.eup %2767 }
 0x588   : > { %v1120_v1 = vmul.f32 %v2768_v63, %v1100_v59  ;;  %v2770_v6 = vpop.eup %2769 }
 0x589   : > { %v1125_v7 = vsub.f32 1.0, %v2770_v6  ;;  %v1127_v15 = vmul.f32 %v2770_v6, %v3401_v33  ;;  %v1282_v33 = vrot.slane %v1771_v20, 2 }
 0x58a   : > { %v1123_v2 = vadd.f32 %v1121_v62, %v1120_v1 }
 0x58c   : > { %2771 = vtanh.f32 %v1123_v2  ;;  %v1779_v2 = vld [vmem:[%s3110_s9 + $0x2a] sm:$0x3f] }
 0x596   : > { %v2772_v14 = vpop.eup %2771 }
 0x597   : > { %v1126_v12 = vmul.f32 %v2772_v14, %v1125_v7 }
 0x599   : > { %v3447_v19 = vadd.f32 %v1127_v15, %v1126_v12 }
 0x59b   : > { %1770 = vst [vmem:[%s3121_s4 + $0x8] sm:$0x3] %v3447_v19  ;;  %1198 = vmatmul.mubr.f32.vlgmr.msra.gmra.mrb[10].mxu0 %v3447_v19  ;;  %2133 = vmatmul.mubr.f32.vlgmr.msra.gmra.mrb[10].mxu1 %v3447_v19 }
 0x59c   : > { %2544 = vmatpush1.bf16.msra.mxu0 %v3129_v10  ;;  %2575 = vmatpush3.bf16.msra.mxu1 %v3148_v30 }
 0x59d   : > { %2546 = vmatprep.subr.bf16.mxu0 %v3131_v11  ;;  %2576 = vmatprep.subr.bf16.mxu1 %v2940_v8 }
 0x59e   : > { %1368 = vmatprep.mubr.f32.mxu0 %v2941_v9  ;;  %2167 = vmatprep.mubr.msk.f32.mxu1 %vm2942_vm0, %v2941_v9 }
 0x5a0   : > { %2548 = vmatpush1.bf16.msra.mxu0 %v3137_v16  ;;  %2578 = vmatpush3.bf16.msra.mxu1 %v3157_v38 }
 0x5a1   : > { %2550 = vmatprep.subr.bf16.mxu0 %v3140_v17  ;;  %2579 = vmatprep.subr.bf16.mxu1 %v2940_v8 }
 0x5a4   : > { %2552 = vmatpush1.bf16.msra.mxu0 %v3143_v22  ;;  %2581 = vmatpush3.bf16.msra.mxu1 %v3167_v47 }
 0x5a5   : > { %2554 = vmatprep.subr.bf16.mxu0 %v3146_v23  ;;  %2582 = vmatprep.subr.bf16.mxu1 %v2940_v8 }
 0x5a8   : > { %2556 = vmatpush1.bf16.msra.mxu0 %v3151_v32  ;;  %2584 = vmatpush3.bf16.msra.mxu1 %v3177_v56 }
 0x5a9   : > { %2558 = vmatprep.subr.bf16.mxu0 %v3154_v34  ;;  %2585 = vmatprep.subr.bf16.mxu1 %v2940_v8 }
 0x5ac   : > { %2560 = vmatpush1.bf16.msra.mxu0 %v3161_v42  ;;  %2587 = vmatpush3.bf16.msra.mxu1 %v3187_v0 }
 0x5ad   : > { %2562 = vmatprep.subr.bf16.mxu0 %v3164_v43  ;;  %2588 = vmatprep.subr.bf16.mxu1 %v2940_v8 }
 0x5b0   : > { %2564 = vmatpush1.bf16.msra.mxu0 %v3171_v51  ;;  %2590 = vmatpush3.bf16.msra.mxu1 %v3195_v5 }
 0x5b1   : > { %2566 = vmatprep.subr.bf16.mxu0 %v3174_v52  ;;  %2591 = vmatprep.subr.bf16.mxu1 %v2940_v8 }
 0x5b4   : > { %2568 = vmatpush1.bf16.msra.mxu0 %v3181_v60  ;;  %2593 = vmatpush3.bf16.msra.mxu1 %v3202_v13 }
 0x5b5   : > { %2570 = vmatprep.subr.bf16.mxu0 %v3184_v61  ;;  %2594 = vmatprep.subr.bf16.mxu1 %v2940_v8 }
 0x5b8   : > { %2572 = vmatpush1.bf16.msra.mxu0 %v3191_v3  ;;  %2596 = vmatpush3.bf16.msra.mxu1 %v3210_v18 }
 0x5b9   : > { %2598 = vmatprep.subr.bf16.mxu0 %v3125_v4  ;;  %2629 = vmatprep.subr.bf16.mxu1 %v2940_v8 }
 0x66e   : > { %v1199_v21 = vpop.f32.mrb[10].mxu0  ;;  %v1270_v24 = vpop.f32.mrb[10].mxu1 }
 0x66f   : > { %v1200_v25 = vadd.f32 %v1199_v21, %v3252_v26  ;;  %v1201_v28 = vpop.f32.mrb[11].mxu0  ;;  %v2134_v29 = vpop.f32.mrb[11].mxu1  ;;  %v1271_v45 = vadd.f32 %v1270_v24, %v3259_v50 }
 0x670   : > { %v1202_v31 = vadd.f32 %v1201_v28, %v3254_v27 }
 0x671   : > { %v1274_v35 = vadd.f32 %v1771_v20, %v1200_v25  ;;  %v1624_v20 = vrot.slane %v1779_v2, 2 }
 0x672   : > { %v1284_v37 = vadd.f32 %v1282_v33, %v1202_v31 }
 0x673   : > { %v1772_v36 = vmul.f32 -1.442695, %v1274_v35 }
 0x674   : > { %v1773_v39 = vmul.f32 -1.442695, %v1284_v37 }
 0x675   : > { %2773 = vpow2.f32 %v1772_v36  ;;  %v1634_v36 = vrot.slane %v1779_v2, 4 }
 0x676   : > { %2775 = vpow2.f32 %v1773_v39 }
 0x67f   : > { %v2774_v40 = vpop.eup %2773 }
 0x680   : > { %v1278_v4 = vadd.f32 1.0, %v2774_v40  ;;  %v2776_v41 = vpop.eup %2775 }
 0x681   : > { %v1288_v44 = vadd.f32 1.0, %v2776_v41 }
 0x682   : > { %2777 = vrcp.f32 %v1278_v4 }
 0x683   : > { %2779 = vrcp.f32 %v1288_v44 }
 0x68c   : > { %v2778_v48 = vpop.eup %2777 }
 0x68d   : > { %v1291_v49 = vmul.f32 %v2778_v48, %v1271_v45  ;;  %v2780_v54 = vpop.eup %2779 }
 0x68e   : > { %v1296_v55 = vsub.f32 1.0, %v2780_v54  ;;  %v1298_v59 = vmul.f32 %v2780_v54, %v3447_v19 }
 0x68f   : > { %v1294_v53 = vadd.f32 %v1292_v46, %v1291_v49 }
 0x691   : > { %2781 = vtanh.f32 %v1294_v53 }
 0x69b   : > { %v2782_v57 = vpop.eup %2781 }
 0x69c   : > { %v1297_v58 = vmul.f32 %v2782_v57, %v1296_v55 }
 0x69e   : > { %v3493_v62 = vadd.f32 %v1298_v59, %v1297_v58 }
 0x6a0   : > { %1774 = vst [vmem:[%s3121_s4 + $0xa] sm:$0x3] %v3493_v62  ;;  %1369 = vmatmul.mubr.f32.vlgmr.msra.gmra.mrb[12].mxu0 %v3493_v62  ;;  %2168 = vmatmul.mubr.f32.vlgmr.msra.gmra.mrb[12].mxu1 %v3493_v62 }
 0x6a1   : > { %2600 = vmatpush1.bf16.msra.mxu0 %v3129_v10  ;;  %2631 = vmatpush3.bf16.msra.mxu1 %v3148_v30 }
 0x6a2   : > { %2602 = vmatprep.subr.bf16.mxu0 %v3131_v11  ;;  %2632 = vmatprep.subr.bf16.mxu1 %v2940_v8 }
 0x6a3   : > { %1539 = vmatprep.mubr.f32.mxu0 %v2941_v9  ;;  %2202 = vmatprep.mubr.msk.f32.mxu1 %vm2942_vm0, %v2941_v9  ;;  %v1775_v9 = vld [vmem:[%s3110_s9 + $0x24] sm:$0x3f] }
 0x6a4   : > { %v1453_v30 = vrot.slane %v1775_v9, 2 }
 0x6a5   : > { %2604 = vmatpush1.bf16.msra.mxu0 %v3137_v16  ;;  %2634 = vmatpush3.bf16.msra.mxu1 %v3157_v38 }
 0x6a6   : > { %2606 = vmatprep.subr.bf16.mxu0 %v3140_v17  ;;  %2635 = vmatprep.subr.bf16.mxu1 %v2940_v8 }
 0x6a9   : > { %2608 = vmatpush1.bf16.msra.mxu0 %v3143_v22  ;;  %2637 = vmatpush3.bf16.msra.mxu1 %v3167_v47 }
 0x6aa   : > { %2610 = vmatprep.subr.bf16.mxu0 %v3146_v23  ;;  %2638 = vmatprep.subr.bf16.mxu1 %v2940_v8 }
 0x6ad   : > { %2612 = vmatpush1.bf16.msra.mxu0 %v3151_v32  ;;  %2640 = vmatpush3.bf16.msra.mxu1 %v3177_v56  ;;  %v1463_v56 = vrot.slane %v1775_v9, 4 }
 0x6ae   : > { %2614 = vmatprep.subr.bf16.mxu0 %v3154_v34  ;;  %2641 = vmatprep.subr.bf16.mxu1 %v2940_v8 }
 0x6b1   : > { %2616 = vmatpush1.bf16.msra.mxu0 %v3161_v42  ;;  %2643 = vmatpush3.bf16.msra.mxu1 %v3187_v0 }
 0x6b2   : > { %2618 = vmatprep.subr.bf16.mxu0 %v3164_v43  ;;  %2644 = vmatprep.subr.bf16.mxu1 %v2940_v8 }
 0x6b5   : > { %2620 = vmatpush1.bf16.msra.mxu0 %v3171_v51  ;;  %2646 = vmatpush3.bf16.msra.mxu1 %v3195_v5 }
 0x6b6   : > { %2622 = vmatprep.subr.bf16.mxu0 %v3174_v52  ;;  %2647 = vmatprep.subr.bf16.mxu1 %v2940_v8 }
 0x6b9   : > { %2624 = vmatpush1.bf16.msra.mxu0 %v3181_v60  ;;  %2649 = vmatpush3.bf16.msra.mxu1 %v3202_v13 }
 0x6ba   : > { %2626 = vmatprep.subr.bf16.mxu0 %v3184_v61  ;;  %2650 = vmatprep.subr.bf16.mxu1 %v2940_v8 }
 0x6bd   : > { %2628 = vmatpush1.bf16.msra.mxu0 %v3191_v3  ;;  %2652 = vmatpush3.bf16.msra.mxu1 %v3210_v18 }
 0x773   : > { %v1370_v10 = vpop.f32.mrb[12].mxu0  ;;  %v1441_v11 = vpop.f32.mrb[12].mxu1 }
 0x774   : > { %v1371_v16 = vadd.f32 %v1370_v10, %v3252_v26  ;;  %v1372_v17 = vpop.f32.mrb[13].mxu0  ;;  %v2169_v22 = vpop.f32.mrb[13].mxu1  ;;  %v1442_v52 = vadd.f32 %v1441_v11, %v3259_v50 }
 0x775   : > { %v1373_v23 = vadd.f32 %v1372_v17, %v3254_v27 }
 0x776   : > { %v1445_v32 = vadd.f32 %v1775_v9, %v1371_v16 }
 0x777   : > { %v1455_v38 = vadd.f32 %v1453_v30, %v1373_v23 }
 0x778   : > { %v1776_v34 = vmul.f32 -1.442695, %v1445_v32 }
 0x779   : > { %v1777_v42 = vmul.f32 -1.442695, %v1455_v38 }
 0x77a   : > { %2783 = vpow2.f32 %v1776_v34 }
 0x77b   : > { %2785 = vpow2.f32 %v1777_v42 }
 0x784   : > { %v2784_v8 = vpop.eup %2783 }
 0x785   : > { %v1449_v43 = vadd.f32 1.0, %v2784_v8  ;;  %v2786_v47 = vpop.eup %2785 }
 0x786   : > { %v1459_v51 = vadd.f32 1.0, %v2786_v47 }
 0x787   : > { %2787 = vrcp.f32 %v1449_v43 }
 0x788   : > { %2789 = vrcp.f32 %v1459_v51 }
 0x791   : > { %v2788_v60 = vpop.eup %2787 }
 0x792   : > { %v1462_v61 = vmul.f32 %v2788_v60, %v1442_v52  ;;  %v2790_v3 = vpop.eup %2789 }
 0x793   : > { %v1467_v5 = vsub.f32 1.0, %v2790_v3  ;;  %v1469_v63 = vmul.f32 %v2790_v3, %v3493_v62 }
 0x794   : > { %v1465_v0 = vadd.f32 %v1463_v56, %v1462_v61 }
 0x796   : > { %2791 = vtanh.f32 %v1465_v0 }
 0x7a0   : > { %v2792_v13 = vpop.eup %2791 }
 0x7a1   : > { %v1468_v18 = vmul.f32 %v2792_v13, %v1467_v5 }
 0x7a3   : > { %v1470_v1 = vadd.f32 %v1469_v63, %v1468_v18 }
 0x7a5   : > { %1778 = vst [vmem:[%s3121_s4 + $0xc] sm:$0x3] %v1470_v1  ;;  %1540 = vmatmul.mubr.f32.vlgmr.msra.gmra.mrb[14].mxu0 %v1470_v1  ;;  %2203 = vmatmul.mubr.f32.vlgmr.msra.gmra.mrb[14].mxu1 %v1470_v1 }
 0x878   : > { %v1541_v6 = vpop.f32.mrb[14].mxu0  ;;  %v1612_v7 = vpop.f32.mrb[14].mxu1 }
 0x879   : > { %v1542_v14 = vadd.f32 %v1541_v6, %v3252_v26  ;;  %v1543_v12 = vpop.f32.mrb[15].mxu0  ;;  %v2204_v15 = vpop.f32.mrb[15].mxu1  ;;  %v1613_v26 = vadd.f32 %v1612_v7, %v3259_v50 }
 0x87a   : > { %v1544_v19 = vadd.f32 %v1543_v12, %v3254_v27 }
 0x87b   : > { %v1616_v21 = vadd.f32 %v1779_v2, %v1542_v14 }
 0x87c   : > { %v1626_v25 = vadd.f32 %v1624_v20, %v1544_v19 }
 0x87d   : > { %v1780_v24 = vmul.f32 -1.442695, %v1616_v21 }
 0x87e   : > { %v1781_v28 = vmul.f32 -1.442695, %v1626_v25 }
 0x87f   : > { %2793 = vpow2.f32 %v1780_v24 }
 0x880   : > { %2795 = vpow2.f32 %v1781_v28 }
 0x889   : > { %v2794_v29 = vpop.eup %2793 }
 0x88a   : > { %v1620_v31 = vadd.f32 1.0, %v2794_v29  ;;  %v2796_v33 = vpop.eup %2795 }
 0x88b   : > { %v1630_v35 = vadd.f32 1.0, %v2796_v33 }
 0x88c   : > { %2797 = vrcp.f32 %v1620_v31 }
 0x88d   : > { %2799 = vrcp.f32 %v1630_v35 }
 0x896   : > { %v2798_v37 = vpop.eup %2797 }
 0x897   : > { %v1633_v27 = vmul.f32 %v2798_v37, %v1613_v26  ;;  %v2800_v40 = vpop.eup %2799 }
 0x898   : > { %v1638_v4 = vsub.f32 1.0, %v2800_v40  ;;  %v1640_v45 = vmul.f32 %v2800_v40, %v1470_v1 }
 0x899   : > { %v1636_v39 = vadd.f32 %v1634_v36, %v1633_v27 }
 0x89b   : > { %2801 = vtanh.f32 %v1636_v39 }
 0x8a5   : > { %v2802_v41 = vpop.eup %2801 }
 0x8a6   : > { %v1639_v44 = vmul.f32 %v2802_v41, %v1638_v4 }
 0x8a8   : > { %v1641_v50 = vadd.f32 %v1640_v45, %v1639_v44 }
 0x8aa   : > { %1782 = vst [vmem:[%s3121_s4 + $0xe] sm:$0x3] %v1641_v50  ;;  %1644 = vst [vmem:[#allocation2] sm:$0x3] %v1641_v50 }
 0x8ab   : > { %2874 = shalt.err (!%p2871_p10)
}
 0x8ac   : > { %s2875_s25 = scalar_lea.hbm %s3547_s27, 256  ;;  %s2879_s9 = scalar_lea.hbm %s3597_s3, 512 }
 0x8ad   : > { %p2876_p2 = scmp.ne.s32.totalorder %s3547_s27, %s2875_s25  ;;  %p2880_p12 = scmp.lt.u32.totalorder %s3547_s27, %s3597_s3 }
 0x8ae   : > { %p2881_p1 = scmp.lt.u32.totalorder %s2879_s9, %s2875_s25  ;;  %p2883_p6 = scmp.lt.u32.totalorder %s2875_s25, %s3547_s27 }
 0x8af   : > { %p2877_p0 = pnand %p2876_p2, %p3058_p11 }
 0x8b0   : > { %p2882_p4 = por %p2881_p1, %p2880_p12 }
 0x8b1   : > { %p2878_p5 = pneg %p2877_p0 }
 0x8b2   : > { %p2884_p8 = por %p2883_p6, %p2882_p4 }
 0x8b4   : > { %p2885_p9 = pnand %p2884_p8, %p2878_p5 }
 0x8b6   : > { %2888 = shalt.err (!%p2885_p9)
}
 0x8b7   : > { %s2944_s18 = smov 32   ;;  %s2945_s22 = smov 2  }
 0x8b8   : > { %2662 = dma.vmem_to_hbm [thread:$0]  (%p3058_p11), %s3549_s5, 256, %s3547_s27, %s1646_s28, %s2944_s18, %s2944_s18, %s2945_s22  }
 0x8b9 PF: > { %s1674_s26 = sand.u32 1, %s2919_s12   ;;  %p3613_p13 = scmp.ne.s32.totalorder %s3602_s19, 0 }
 0x8ba   : > { %p3614_p3 = scmp.ge.s32.totalorder %s2931_s15, 2  ;;  %s1675_s10 = scalar_lea.sflag [#allocation5], %s1674_s26 }
 0x8bc   : > { %p2673_p7 = pnand %p3614_p3, %p3613_p13 }
 0x8be   : > { %2914 = dma.done.wait (!%p2673_p7), %s1675_s10, 256  }
 0x8bf   : > { %2916 = vsyncadd (!%p2673_p7), %s1675_s10, 4294967040  ;;  %p17_p10 = scmp.ge.s32.totalorder %s3023_s24, 4   ;;  %s3615_s12 = smov %s2923_s13 }
 0x8c0   : > { %s3616_s13 = smov %s2927_s14  ;;  %s3617_s14 = smov %s3054_s17 }
 0x8c1   : > { %s3618_s15 = smov %s3023_s24  ;;  %19 = sbr.rel (!%p17_p10) target bundleno = 6 (0x6), region = 99 }
 0x8c8   :  { %1680 = vsyncpa [#allocation4], 1 }
 0x8c9   :  { %1682 = vsyncpa [#allocation4 + $0x1], 1 }
 0x8ca   :  { %1683 = vsyncpa [#allocation7], 1 }
 0x8cb   :  { %1684 = vsyncpa [#allocation5], 1 }
 0x8cc   :  { %1686 = vsyncpa [#allocation5 + $0x1], 1 }

</bundles_post_ra>
